<compile_context>
chip_gen: v6e
topology: v6e:2x2x1
jax: 0.10.0
libtpu: 0.0.40
codegen_flags: <defaults>
</compile_context>

<pallas_src>
import jax
import jax.numpy as jnp
from jax.experimental import pallas as pl
from jax.experimental.pallas import tpu as pltpu  # noqa: F401  (TPU backend)

# ----------------------------- model hyper-params -----------------------------
FILTERS = [3, 8, 16, 16]          # dataset.num_features=3 inserted at front
K_ORDER = [3, 3, 3]               # polygon_order (Chebyshev order per layer)
N_LAYERS = 2                      # config['n_layers']
Z_DIM = 8                         # config['z']
NODE_LEVELS = [64, 32, 16]        # N0 (fine mesh), N1, N2 (coarse mesh)
BATCH = 2                         # data.num_graphs


# ----------------------------- fused forward kernel ---------------------------
def _mesh_vae_kernel(
    # activations / noise (lane-dense)
    x_ref, eps_ref,
    # block-diagonal graph operators, right-multiplied:  X_out = X_in @ blockdiag_B(M^T)
    p1a0_ref, p2a0_ref, p1a1_ref, p2a1_ref, p1a2_ref, p2a2_ref,
    d0_ref, d1_ref, u1_ref, u0_ref,
    # encoder Chebyshev weights (K, Fout, Fin) and biases (Fout, 1)
    ew0_ref, eb0_ref, ew1_ref, eb1_ref,
    # latent-head constants (flatten-free masked contraction)
    whA_ref, hb_ref, maskE_ref, onesR_ref, onesL_ref,
    # dec_lin constants (z -> lane-dense (F3, B*N2))
    stackI_ref, rep_ref, maskD_ref, wdec_ref, bdec_ref,
    # decoder Chebyshev weights / biases
    dw0_ref, db0_ref, dw1_ref, db1_ref, dw2_ref,
    # outputs
    recon_ref, mu_ref, logvar_ref, z_ref,
):
    f32 = jnp.float32

    def cheb(x_t, op1_ref, op2_ref, w_ref, b_ref, relu):
        # ChebConv_Coma in lane-dense layout with precomputed T_k(A) operators:
        #   T0 = X, T1 = X @ bd(A^T), T2 = X @ bd((2A^2 - I)^T);  out = sum_k W_k^T @ T_k.
        # T1 / T2 matmuls are independent (no serial recurrence through the MXU FIFO).
        t1 = jnp.dot(x_t, op1_ref[...], preferred_element_type=f32)
        t2 = jnp.dot(x_t, op2_ref[...], preferred_element_type=f32)
        out = (jnp.dot(w_ref[0], x_t, preferred_element_type=f32)
               + jnp.dot(w_ref[1], t1, preferred_element_type=f32)
               + jnp.dot(w_ref[2], t2, preferred_element_type=f32))
        if b_ref is not None:
            out = out + b_ref[...]                        # (Fout, 1) -> lane broadcast
        if relu:
            out = jnp.maximum(out, 0.0)
        return out

    # ----------------------------- encoder -----------------------------------
    h = x_ref[...]                                                     # (F0, B*N0)
    h = cheb(h, p1a0_ref, p2a0_ref, ew0_ref, eb0_ref, True)            # (F1, B*N0)
    h = jnp.dot(h, d0_ref[...], preferred_element_type=f32)            # (F1, B*N1)
    h = cheb(h, p1a1_ref, p2a1_ref, ew1_ref, eb1_ref, True)            # (F2, B*N1)
    h = jnp.dot(h, d1_ref[...], preferred_element_type=f32)            # (F2, B*N2)

    # ------------- latent heads: mu / log_var + reparameterize ---------------
    # torch's (B,N2,F2)->(B,N2*F2) flatten + two Linear heads, done without any
    # in-kernel reshape: contract F2 on the MXU, mask the node diagonal, block-sum
    # lanes->batch, block-sum rows->z.
    c = jnp.dot(whA_ref[...], h, preferred_element_type=f32)           # (2*Z*N2, B*N2)
    c = c * maskE_ref[...]
    s = jnp.dot(c, onesR_ref[...], preferred_element_type=f32)         # (2*Z*N2, B)
    heads = jnp.dot(onesL_ref[...], s, preferred_element_type=f32) + hb_ref[...]
    heads = jnp.maximum(heads, 0.0)        # module applies F.relu to BOTH linear heads
    mu = heads[0:Z_DIM, :]                                             # (Z, B)
    log_var = heads[Z_DIM:2 * Z_DIM, :]                                # (Z, B)
    z = mu + eps_ref[...] * jnp.exp(0.5 * log_var)                     # reparameterize
    mu_ref[...] = mu
    logvar_ref[...] = log_var
    z_ref[...] = z

    # -------- dec_lin: z -> relu(Linear) laid out lane-dense (F3, B*N2) ------
    y = jnp.dot(stackI_ref[...], z, preferred_element_type=f32)        # (N2*Z, B)
    y = jnp.dot(y, rep_ref[...], preferred_element_type=f32)           # (N2*Z, B*N2)
    y = y * maskD_ref[...]
    y = jnp.dot(wdec_ref[...], y, preferred_element_type=f32) + bdec_ref[...]
    y = jnp.maximum(y, 0.0)                                            # (F3, B*N2)

    # ----------------------------- decoder -----------------------------------
    y = jnp.dot(y, u1_ref[...], preferred_element_type=f32)            # (F3, B*N1)
    y = cheb(y, p1a1_ref, p2a1_ref, dw0_ref, db0_ref, True)            # (F2, B*N1)
    y = jnp.dot(y, u0_ref[...], preferred_element_type=f32)            # (F2, B*N0)
    y = cheb(y, p1a0_ref, p2a0_ref, dw1_ref, db1_ref, True)            # (F1, B*N0)
    y = cheb(y, p1a2_ref, p2a2_ref, dw2_ref, None, False)              # (F0, B*N0)
    recon_ref[...] = y


def mesh_vae_forward(ops, x_flat, eps):
    """x_flat: (BATCH*N0, 3) like data.x; eps: (BATCH, Z_DIM) ~ N(0,1)."""
    F0, N0 = FILTERS[0], NODE_LEVELS[0]
    x_t = x_flat.T                      # lane-dense (F0, B*N0): layout plumbing only
    eps_t = eps.T                       # (Z, B)
    recon_t, mu_t, logvar_t, z_t = pl.pallas_call(
        _mesh_vae_kernel,
        out_shape=(
            jax.ShapeDtypeStruct((F0, BATCH * N0), jnp.float32),
            jax.ShapeDtypeStruct((Z_DIM, BATCH), jnp.float32),
            jax.ShapeDtypeStruct((Z_DIM, BATCH), jnp.float32),
            jax.ShapeDtypeStruct((Z_DIM, BATCH), jnp.float32),
        ),
    )(
        x_t, eps_t,
        ops["p1a0"], ops["p2a0"], ops["p1a1"], ops["p2a1"], ops["p1a2"], ops["p2a2"],
        ops["d0"], ops["d1"], ops["u1"], ops["u0"],
        ops["ew0"], ops["eb0"], ops["ew1"], ops["eb1"],
        ops["whA"], ops["hb"], ops["maskE"], ops["onesR"], ops["onesL"],
        ops["stackI"], ops["rep"], ops["maskD"], ops["wdec"], ops["bdec"],
        ops["dw0"], ops["db0"], ops["dw1"], ops["db1"], ops["dw2"],
    )
    return recon_t.T, mu_t.T, logvar_t.T, z_t.T


# ----------------------------- synthetic mesh operators -----------------------
# TODO(synk): real CoMA meshes provide sparse adjacency / down / up-sample matrices from
#             the dataset; dense ring / 2:1 placeholders validate plumbing & perf only.
def ring_norm_adj(n):
    """Symmetric ring graph, then ChebConv_Coma.norm: deg^-1/2 * w * deg^-1/2 (deg=2)."""
    A = jnp.zeros((n, n), jnp.float32)
    idx = jnp.arange(n)
    A = A.at[idx, (idx + 1) % n].set(0.5)
    A = A.at[idx, (idx - 1) % n].set(0.5)
    return A


def down_mat(n_out, n_in):
    r = jnp.arange(n_out)
    M = jnp.zeros((n_out, n_in), jnp.float32)
    M = M.at[r, 2 * r].set(0.5)
    M = M.at[r, 2 * r + 1].set(0.5)
    return M


def up_mat(n_out, n_in):
    r = jnp.arange(n_in)
    M = jnp.zeros((n_out, n_in), jnp.float32)
    M = M.at[2 * r, r].set(1.0)
    M = M.at[2 * r + 1, r].set(1.0)
    return M


# ----------------------------- parameter init (module layout) -----------------
def init_params(key):
    N0, N1, N2 = NODE_LEVELS
    keys = iter(jax.random.split(key, 24))
    p = {}

    # TODO(synk): the module's final decoder conv indexes A_norm[-1]; with synthetic
    #             operators we keep a dedicated fine-resolution adjacency at that slot.
    p["A"] = [ring_norm_adj(N0), ring_norm_adj(N1), ring_norm_adj(N0)]
    p["D"] = [down_mat(N1, N0), down_mat(N2, N1)]           # downsample_matrices
    p["U"] = [up_mat(N0, N1), up_mat(N1, N2)]               # upsample_matrices

    # encoder Cheb convs: ChebConv_Coma(filters[i], filters[i+1], K[i])
    p["cheb_w"], p["cheb_b"] = [], []
    for i in range(len(FILTERS) - 2):
        p["cheb_w"].append(0.1 * jax.random.normal(
            next(keys), (K_ORDER[i], FILTERS[i], FILTERS[i + 1]), jnp.float32))
        p["cheb_b"].append(0.1 * jax.random.normal(next(keys), (FILTERS[i + 1],), jnp.float32))

    # decoder Cheb convs: ChebConv_Coma(filters[-i-1], filters[-i-2], K[i]); last bias=None
    p["cheb_dec_w"], p["cheb_dec_b"] = [], []
    n_dec = len(FILTERS) - 1
    for i in range(n_dec):
        fin, fout = FILTERS[-i - 1], FILTERS[-i - 2]
        p["cheb_dec_w"].append(0.1 * jax.random.normal(
            next(keys), (K_ORDER[i], fin, fout), jnp.float32))
        if i < n_dec - 1:
            p["cheb_dec_b"].append(0.1 * jax.random.normal(next(keys), (fout,), jnp.float32))

    # dense layers (torch Linear weight layout: (out_features, in_features))
    enc_in = NODE_LEVELS[-1] * FILTERS[-1]                   # 16 * 16 = 256
    dec_out = FILTERS[-1] * NODE_LEVELS[-1]                  # 16 * 16 = 256
    bnd = 1.0 / jnp.sqrt(jnp.float32(enc_in))
    p["enc_mu_w"] = 0.1 * jax.random.normal(next(keys), (Z_DIM, enc_in), jnp.float32)
    p["enc_mu_b"] = jax.random.uniform(next(keys), (Z_DIM,), jnp.float32, -bnd, bnd)
    p["enc_sig_w"] = 0.1 * jax.random.normal(next(keys), (Z_DIM, enc_in), jnp.float32)
    p["enc_sig_b"] = jax.random.uniform(next(keys), (Z_DIM,), jnp.float32, -bnd, bnd)
    bnd2 = 1.0 / jnp.sqrt(jnp.float32(Z_DIM))
    p["dec_w"] = 0.1 * jax.random.normal(next(keys), (dec_out, Z_DIM), jnp.float32)
    p["dec_b"] = jax.random.uniform(next(keys), (dec_out,), jnp.float32, -bnd2, bnd2)
    return p


# ------------- host-side precompute: kernel operands (all trace-time) ---------
def _blockdiag(M, reps):
    r, c = M.shape
    out = jnp.zeros((reps * r, reps * c), M.dtype)
    for b in range(reps):
        out = out.at[b * r:(b + 1) * r, b * c:(b + 1) * c].set(M)
    return out


def _op(M):
    """Node-space operator h_out = M @ h  ->  lane-dense right operand blockdiag_B(M^T)."""
    return _blockdiag(M.T, BATCH)


def pack_operands(p):
    N0, N1, N2 = NODE_LEVELS
    B, Z = BATCH, Z_DIM
    F2, F3 = FILTERS[2], FILTERS[3]
    o = {}

    # Chebyshev polynomial operators T1=A, T2=2A^2-I precomputed per level.
    def cheb_ops(A):
        n = A.shape[0]
        return _op(A), _op(2.0 * (A @ A) - jnp.eye(n, dtype=jnp.float32))

    o["p1a0"], o["p2a0"] = cheb_ops(p["A"][0])               # (128,128) each
    o["p1a1"], o["p2a1"] = cheb_ops(p["A"][1])               # (64,64)
    o["p1a2"], o["p2a2"] = cheb_ops(p["A"][2])               # (128,128)
    o["d0"], o["d1"] = _op(p["D"][0]), _op(p["D"][1])        # (128,64), (64,32)
    o["u1"], o["u0"] = _op(p["U"][1]), _op(p["U"][0])        # (32,64), (64,128)

    # Cheb weights transposed for left multiplication (K, Fout, Fin); biases (Fout, 1).
    o["ew0"] = jnp.transpose(p["cheb_w"][0], (0, 2, 1))
    o["eb0"] = p["cheb_b"][0].reshape(-1, 1)
    o["ew1"] = jnp.transpose(p["cheb_w"][1], (0, 2, 1))
    o["eb1"] = p["cheb_b"][1].reshape(-1, 1)
    o["dw0"] = jnp.transpose(p["cheb_dec_w"][0], (0, 2, 1))
    o["db0"] = p["cheb_dec_b"][0].reshape(-1, 1)
    o["dw1"] = jnp.transpose(p["cheb_dec_w"][1], (0, 2, 1))
    o["db1"] = p["cheb_dec_b"][1].reshape(-1, 1)
    o["dw2"] = jnp.transpose(p["cheb_dec_w"][2], (0, 2, 1))

    # Latent-head constants (mu & sigma stacked): row index r = (head*Z + z)*N2 + n.
    w_heads = jnp.stack([p["enc_mu_w"], p["enc_sig_w"]], 0)            # (2, Z, N2*F2)
    o["whA"] = w_heads.reshape(2 * Z, N2, F2).reshape(2 * Z * N2, F2)  # [r, f]
    o["hb"] = jnp.concatenate([p["enc_mu_b"], p["enc_sig_b"]], 0).reshape(2 * Z, 1)
    rr = jnp.arange(2 * Z * N2)
    cc = jnp.arange(B * N2)
    o["maskE"] = ((rr[:, None] % N2) == (cc[None, :] % N2)).astype(jnp.float32)
    o["onesR"] = ((cc[:, None] // N2) == jnp.arange(B)[None, :]).astype(jnp.float32)
    o["onesL"] = ((rr[None, :] // N2) == jnp.arange(2 * Z)[:, None]).astype(jnp.float32)

    # dec_lin constants: replicate z over node lanes, mask the node diagonal, contract
    # with the (F3, N2*Z) weight; bias pre-tiled lane-dense over the batch blocks.
    o["stackI"] = jnp.tile(jnp.eye(Z, dtype=jnp.float32), (N2, 1))     # (N2*Z, Z)
    o["rep"] = o["onesR"].T                                            # (B, B*N2)
    rrd = jnp.arange(N2 * Z)
    o["maskD"] = ((rrd[:, None] // Z) == (cc[None, :] % N2)).astype(jnp.float32)
    o["wdec"] = jnp.transpose(p["dec_w"].reshape(N2, F3, Z), (1, 0, 2)).reshape(F3, N2 * Z)
    o["bdec"] = jnp.tile(p["dec_b"].reshape(N2, F3).T, (1, B))         # (F3, B*N2)
    return o


# ----------------------------- pure-JAX reference (module semantics) ----------
def reference_forward(p, x_flat, eps):
    B, F0 = BATCH, FILTERS[0]
    x = x_flat.reshape(B, -1, F0)

    def cheb(h, A, W, bias):            # h (B,N,Fin); W (K,Fin,Fout); bias (Fout,) | None
        K = W.shape[0]
        t0 = h
        out = jnp.einsum('bnf,fo->bno', t0, W[0])
        t1 = jnp.einsum('nm,bmf->bnf', A, t0)
        out = out + jnp.einsum('bnf,fo->bno', t1, W[1])
        for k in range(2, K):
            t2 = 2.0 * jnp.einsum('nm,bmf->bnf', A, t1) - t0
            out = out + jnp.einsum('bnf,fo->bno', t2, W[k])
            t0, t1 = t1, t2
        if bias is not None:
            out = out + bias
        return out

    h = x
    for i in range(N_LAYERS):
        h = jax.nn.relu(cheb(h, p["A"][i], p["cheb_w"][i], p["cheb_b"][i]))
        h = jnp.einsum('nm,bmf->bnf', p["D"][i], h)
    hf = h.reshape(B, -1)
    mu = jax.nn.relu(hf @ p["enc_mu_w"].T + p["enc_mu_b"])
    log_var = jax.nn.relu(hf @ p["enc_sig_w"].T + p["enc_sig_b"])
    z = mu + eps * jnp.exp(0.5 * log_var)
    y = jax.nn.relu(z @ p["dec_w"].T + p["dec_b"])
    y = y.reshape(B, -1, FILTERS[-1])
    for i in range(N_LAYERS):
        y = jnp.einsum('nm,bmf->bnf', p["U"][-i - 1], y)
        y = jax.nn.relu(cheb(y, p["A"][N_LAYERS - i - 1], p["cheb_dec_w"][i], p["cheb_dec_b"][i]))
    y = cheb(y, p["A"][-1], p["cheb_dec_w"][2], None)
    return y.reshape(-1, F0), mu, log_var, z


# ----------------------------- main ---------------------------------------------
if __name__ == "__main__":
    key = jax.random.PRNGKey(0)
    k_param, k_x, k_eps = jax.random.split(key, 3)

    params = init_params(k_param)
    ops = pack_operands(params)          # host-side precompute, outside jit

    x_flat = jax.random.normal(k_x, (BATCH * NODE_LEVELS[0], FILTERS[0]), jnp.float32)
    # TODO(synk): torch.randn_like inside reparameterize is stateful; eps is drawn
    # host-side with a fixed PRNG key and fed into the fused kernel.
    eps = jax.random.normal(k_eps, (BATCH, Z_DIM), jnp.float32)

    fwd = jax.jit(mesh_vae_forward)
    recon, mu, log_var, z = fwd(ops, x_flat, eps)
    jax.block_until_ready((recon, mu, log_var, z))

    assert recon.shape == (BATCH * NODE_LEVELS[0], FILTERS[0])
    assert mu.shape == (BATCH, Z_DIM) and log_var.shape == (BATCH, Z_DIM) and z.shape == (BATCH, Z_DIM)

    # parity check against a straightforward pure-JAX implementation of the module
    r_recon, r_mu, r_lv, r_z = reference_forward(params, x_flat, eps)
    for got, want in ((recon, r_recon), (mu, r_mu), (log_var, r_lv), (z, r_z)):
        assert jnp.allclose(got, want, rtol=1e-3, atol=1e-4), float(jnp.max(jnp.abs(got - want)))

    print("KERNEL_OK")
</pallas_src>

<mosaic_0001>
module attributes {stable_mosaic.version = 11 : i64} {
  func.func @_mesh_vae_kernel(%arg0: memref<3x128xf32, #tpu.memory_space<vmem>>, %arg1: memref<8x2xf32, #tpu.memory_space<vmem>>, %arg2: memref<128x128xf32, #tpu.memory_space<vmem>>, %arg3: memref<128x128xf32, #tpu.memory_space<vmem>>, %arg4: memref<64x64xf32, #tpu.memory_space<vmem>>, %arg5: memref<64x64xf32, #tpu.memory_space<vmem>>, %arg6: memref<128x128xf32, #tpu.memory_space<vmem>>, %arg7: memref<128x128xf32, #tpu.memory_space<vmem>>, %arg8: memref<128x64xf32, #tpu.memory_space<vmem>>, %arg9: memref<64x32xf32, #tpu.memory_space<vmem>>, %arg10: memref<32x64xf32, #tpu.memory_space<vmem>>, %arg11: memref<64x128xf32, #tpu.memory_space<vmem>>, %arg12: memref<3x8x3xf32, #tpu.memory_space<vmem>>, %arg13: memref<8x1xf32, #tpu.memory_space<vmem>>, %arg14: memref<3x16x8xf32, #tpu.memory_space<vmem>>, %arg15: memref<16x1xf32, #tpu.memory_space<vmem>>, %arg16: memref<256x16xf32, #tpu.memory_space<vmem>>, %arg17: memref<16x1xf32, #tpu.memory_space<vmem>>, %arg18: memref<256x32xf32, #tpu.memory_space<vmem>>, %arg19: memref<32x2xf32, #tpu.memory_space<vmem>>, %arg20: memref<16x256xf32, #tpu.memory_space<vmem>>, %arg21: memref<128x8xf32, #tpu.memory_space<vmem>>, %arg22: memref<2x32xf32, #tpu.memory_space<vmem>>, %arg23: memref<128x32xf32, #tpu.memory_space<vmem>>, %arg24: memref<16x128xf32, #tpu.memory_space<vmem>>, %arg25: memref<16x32xf32, #tpu.memory_space<vmem>>, %arg26: memref<3x16x16xf32, #tpu.memory_space<vmem>>, %arg27: memref<16x1xf32, #tpu.memory_space<vmem>>, %arg28: memref<3x8x16xf32, #tpu.memory_space<vmem>>, %arg29: memref<8x1xf32, #tpu.memory_space<vmem>>, %arg30: memref<3x3x8xf32, #tpu.memory_space<vmem>>, %arg31: memref<3x128xf32, #tpu.memory_space<vmem>>, %arg32: memref<8x2xf32, #tpu.memory_space<vmem>>, %arg33: memref<8x2xf32, #tpu.memory_space<vmem>>, %arg34: memref<8x2xf32, #tpu.memory_space<vmem>>) attributes {dimension_semantics = [], scalar_prefetch = 0 : i64, scratch_operands = 0 : i64, tpu.core_type = #tpu.core_type<tc>} {
    %c0 = arith.constant 0 : index
    %c0_0 = arith.constant 0 : index
    %0 = vector.load %arg0[%c0, %c0_0] : memref<3x128xf32, #tpu.memory_space<vmem>>, vector<3x128xf32>
    %c0_1 = arith.constant 0 : index
    %c0_2 = arith.constant 0 : index
    %1 = vector.load %arg2[%c0_1, %c0_2] : memref<128x128xf32, #tpu.memory_space<vmem>>, vector<128x128xf32>
    %cst = arith.constant dense<0.000000e+00> : vector<3x128xf32>
    %2 = tpu.matmul %0, %1, %cst {dimension_numbers = #tpu.dot_dimension_numbers<[1], [0], [0], [1], [0, 0, 1, 1], [], []>} : vector<3x128xf32>, vector<128x128xf32>, vector<3x128xf32> -> vector<3x128xf32>
    %c0_3 = arith.constant 0 : index
    %c0_4 = arith.constant 0 : index
    %3 = vector.load %arg3[%c0_3, %c0_4] : memref<128x128xf32, #tpu.memory_space<vmem>>, vector<128x128xf32>
    %cst_5 = arith.constant dense<0.000000e+00> : vector<3x128xf32>
    %4 = tpu.matmul %0, %3, %cst_5 {dimension_numbers = #tpu.dot_dimension_numbers<[1], [0], [0], [1], [0, 0, 1, 1], [], []>} : vector<3x128xf32>, vector<128x128xf32>, vector<3x128xf32> -> vector<3x128xf32>
    %c0_6 = arith.constant 0 : index
    %c0_7 = arith.constant 0 : index
    %c0_8 = arith.constant 0 : index
    %5 = vector.load %arg12[%c0_6, %c0_7, %c0_8] : memref<3x8x3xf32, #tpu.memory_space<vmem>>, vector<1x8x3xf32>
    %6 = vector.shape_cast %5 : vector<1x8x3xf32> to vector<8x3xf32>
    %cst_9 = arith.constant dense<0.000000e+00> : vector<8x128xf32>
    %7 = tpu.matmul %6, %0, %cst_9 {dimension_numbers = #tpu.dot_dimension_numbers<[1], [0], [0], [1], [0, 0, 1, 1], [], []>} : vector<8x3xf32>, vector<3x128xf32>, vector<8x128xf32> -> vector<8x128xf32>
    %c1 = arith.constant 1 : index
    %c0_10 = arith.constant 0 : index
    %c0_11 = arith.constant 0 : index
    %8 = vector.load %arg12[%c1, %c0_10, %c0_11] : memref<3x8x3xf32, #tpu.memory_space<vmem>>, vector<1x8x3xf32>
    %9 = vector.shape_cast %8 : vector<1x8x3xf32> to vector<8x3xf32>
    %cst_12 = arith.constant dense<0.000000e+00> : vector<8x128xf32>
    %10 = tpu.matmul %9, %2, %cst_12 {dimension_numbers = #tpu.dot_dimension_numbers<[1], [0], [0], [1], [0, 0, 1, 1], [], []>} : vector<8x3xf32>, vector<3x128xf32>, vector<8x128xf32> -> vector<8x128xf32>
    %11 = arith.addf %7, %10 : vector<8x128xf32>
    %c2 = arith.constant 2 : index
    %c0_13 = arith.constant 0 : index
    %c0_14 = arith.constant 0 : index
    %12 = vector.load %arg12[%c2, %c0_13, %c0_14] : memref<3x8x3xf32, #tpu.memory_space<vmem>>, vector<1x8x3xf32>
    %13 = vector.shape_cast %12 : vector<1x8x3xf32> to vector<8x3xf32>
    %cst_15 = arith.constant dense<0.000000e+00> : vector<8x128xf32>
    %14 = tpu.matmul %13, %4, %cst_15 {dimension_numbers = #tpu.dot_dimension_numbers<[1], [0], [0], [1], [0, 0, 1, 1], [], []>} : vector<8x3xf32>, vector<3x128xf32>, vector<8x128xf32> -> vector<8x128xf32>
    %15 = arith.addf %11, %14 : vector<8x128xf32>
    %c0_16 = arith.constant 0 : index
    %c0_17 = arith.constant 0 : index
    %16 = vector.load %arg13[%c0_16, %c0_17] : memref<8x1xf32, #tpu.memory_space<vmem>>, vector<8x1xf32>
    %17 = vector.broadcast %16 : vector<8x1xf32> to vector<8x128xf32>
    %18 = arith.addf %15, %17 : vector<8x128xf32>
    %cst_18 = arith.constant 0.000000e+00 : f32
    %19 = vector.broadcast %cst_18 : f32 to vector<8x128xf32>
    %20 = arith.maximumf %18, %19 : vector<8x128xf32>
    %c0_19 = arith.constant 0 : index
    %c0_20 = arith.constant 0 : index
    %21 = vector.load %arg8[%c0_19, %c0_20] : memref<128x64xf32, #tpu.memory_space<vmem>>, vector<128x64xf32>
    %cst_21 = arith.constant dense<0.000000e+00> : vector<8x64xf32>
    %22 = tpu.matmul %20, %21, %cst_21 {dimension_numbers = #tpu.dot_dimension_numbers<[1], [0], [0], [1], [0, 0, 1, 1], [], []>} : vector<8x128xf32>, vector<128x64xf32>, vector<8x64xf32> -> vector<8x64xf32>
    %c0_22 = arith.constant 0 : index
    %c0_23 = arith.constant 0 : index
    %23 = vector.load %arg4[%c0_22, %c0_23] : memref<64x64xf32, #tpu.memory_space<vmem>>, vector<64x64xf32>
    %cst_24 = arith.constant dense<0.000000e+00> : vector<8x64xf32>
    %24 = tpu.matmul %22, %23, %cst_24 {dimension_numbers = #tpu.dot_dimension_numbers<[1], [0], [0], [1], [0, 0, 1, 1], [], []>} : vector<8x64xf32>, vector<64x64xf32>, vector<8x64xf32> -> vector<8x64xf32>
    %c0_25 = arith.constant 0 : index
    %c0_26 = arith.constant 0 : index
    %25 = vector.load %arg5[%c0_25, %c0_26] : memref<64x64xf32, #tpu.memory_space<vmem>>, vector<64x64xf32>
    %cst_27 = arith.constant dense<0.000000e+00> : vector<8x64xf32>
    %26 = tpu.matmul %22, %25, %cst_27 {dimension_numbers = #tpu.dot_dimension_numbers<[1], [0], [0], [1], [0, 0, 1, 1], [], []>} : vector<8x64xf32>, vector<64x64xf32>, vector<8x64xf32> -> vector<8x64xf32>
    %c0_28 = arith.constant 0 : index
    %c0_29 = arith.constant 0 : index
    %c0_30 = arith.constant 0 : index
    %27 = vector.load %arg14[%c0_28, %c0_29, %c0_30] : memref<3x16x8xf32, #tpu.memory_space<vmem>>, vector<1x16x8xf32>
    %28 = vector.shape_cast %27 : vector<1x16x8xf32> to vector<16x8xf32>
    %cst_31 = arith.constant dense<0.000000e+00> : vector<16x64xf32>
    %29 = tpu.matmul %28, %22, %cst_31 {dimension_numbers = #tpu.dot_dimension_numbers<[1], [0], [0], [1], [0, 0, 1, 1], [], []>} : vector<16x8xf32>, vector<8x64xf32>, vector<16x64xf32> -> vector<16x64xf32>
    %c1_32 = arith.constant 1 : index
    %c0_33 = arith.constant 0 : index
    %c0_34 = arith.constant 0 : index
    %30 = vector.load %arg14[%c1_32, %c0_33, %c0_34] : memref<3x16x8xf32, #tpu.memory_space<vmem>>, vector<1x16x8xf32>
    %31 = vector.shape_cast %30 : vector<1x16x8xf32> to vector<16x8xf32>
    %cst_35 = arith.constant dense<0.000000e+00> : vector<16x64xf32>
    %32 = tpu.matmul %31, %24, %cst_35 {dimension_numbers = #tpu.dot_dimension_numbers<[1], [0], [0], [1], [0, 0, 1, 1], [], []>} : vector<16x8xf32>, vector<8x64xf32>, vector<16x64xf32> -> vector<16x64xf32>
    %33 = arith.addf %29, %32 : vector<16x64xf32>
    %c2_36 = arith.constant 2 : index
    %c0_37 = arith.constant 0 : index
    %c0_38 = arith.constant 0 : index
    %34 = vector.load %arg14[%c2_36, %c0_37, %c0_38] : memref<3x16x8xf32, #tpu.memory_space<vmem>>, vector<1x16x8xf32>
    %35 = vector.shape_cast %34 : vector<1x16x8xf32> to vector<16x8xf32>
    %cst_39 = arith.constant dense<0.000000e+00> : vector<16x64xf32>
    %36 = tpu.matmul %35, %26, %cst_39 {dimension_numbers = #tpu.dot_dimension_numbers<[1], [0], [0], [1], [0, 0, 1, 1], [], []>} : vector<16x8xf32>, vector<8x64xf32>, vector<16x64xf32> -> vector<16x64xf32>
    %37 = arith.addf %33, %36 : vector<16x64xf32>
    %c0_40 = arith.constant 0 : index
    %c0_41 = arith.constant 0 : index
    %38 = vector.load %arg15[%c0_40, %c0_41] : memref<16x1xf32, #tpu.memory_space<vmem>>, vector<16x1xf32>
    %39 = vector.broadcast %38 : vector<16x1xf32> to vector<16x64xf32>
    %40 = arith.addf %37, %39 : vector<16x64xf32>
    %cst_42 = arith.constant 0.000000e+00 : f32
    %41 = vector.broadcast %cst_42 : f32 to vector<16x64xf32>
    %42 = arith.maximumf %40, %41 : vector<16x64xf32>
    %c0_43 = arith.constant 0 : index
    %c0_44 = arith.constant 0 : index
    %43 = vector.load %arg9[%c0_43, %c0_44] : memref<64x32xf32, #tpu.memory_space<vmem>>, vector<64x32xf32>
    %cst_45 = arith.constant dense<0.000000e+00> : vector<16x32xf32>
    %44 = tpu.matmul %42, %43, %cst_45 {dimension_numbers = #tpu.dot_dimension_numbers<[1], [0], [0], [1], [0, 0, 1, 1], [], []>} : vector<16x64xf32>, vector<64x32xf32>, vector<16x32xf32> -> vector<16x32xf32>
    %c0_46 = arith.constant 0 : index
    %c0_47 = arith.constant 0 : index
    %45 = vector.load %arg16[%c0_46, %c0_47] : memref<256x16xf32, #tpu.memory_space<vmem>>, vector<256x16xf32>
    %cst_48 = arith.constant dense<0.000000e+00> : vector<256x32xf32>
    %46 = tpu.matmul %45, %44, %cst_48 {dimension_numbers = #tpu.dot_dimension_numbers<[1], [0], [0], [1], [0, 0, 1, 1], [], []>} : vector<256x16xf32>, vector<16x32xf32>, vector<256x32xf32> -> vector<256x32xf32>
    %c0_49 = arith.constant 0 : index
    %c0_50 = arith.constant 0 : index
    %47 = vector.load %arg18[%c0_49, %c0_50] : memref<256x32xf32, #tpu.memory_space<vmem>>, vector<256x32xf32>
    %48 = arith.mulf %46, %47 : vector<256x32xf32>
    %c0_51 = arith.constant 0 : index
    %c0_52 = arith.constant 0 : index
    %49 = vector.load %arg19[%c0_51, %c0_52] : memref<32x2xf32, #tpu.memory_space<vmem>>, vector<32x2xf32>
    %cst_53 = arith.constant dense<0.000000e+00> : vector<256x2xf32>
    %50 = tpu.matmul %48, %49, %cst_53 {dimension_numbers = #tpu.dot_dimension_numbers<[1], [0], [0], [1], [0, 0, 1, 1], [], []>} : vector<256x32xf32>, vector<32x2xf32>, vector<256x2xf32> -> vector<256x2xf32>
    %c0_54 = arith.constant 0 : index
    %c0_55 = arith.constant 0 : index
    %51 = vector.load %arg20[%c0_54, %c0_55] : memref<16x256xf32, #tpu.memory_space<vmem>>, vector<16x256xf32>
    %cst_56 = arith.constant dense<0.000000e+00> : vector<16x2xf32>
    %52 = tpu.matmul %51, %50, %cst_56 {dimension_numbers = #tpu.dot_dimension_numbers<[1], [0], [0], [1], [0, 0, 1, 1], [], []>} : vector<16x256xf32>, vector<256x2xf32>, vector<16x2xf32> -> vector<16x2xf32>
    %c0_57 = arith.constant 0 : index
    %c0_58 = arith.constant 0 : index
    %53 = vector.load %arg17[%c0_57, %c0_58] : memref<16x1xf32, #tpu.memory_space<vmem>>, vector<16x1xf32>
    %54 = vector.broadcast %53 : vector<16x1xf32> to vector<16x2xf32>
    %55 = arith.addf %52, %54 : vector<16x2xf32>
    %cst_59 = arith.constant 0.000000e+00 : f32
    %56 = vector.broadcast %cst_59 : f32 to vector<16x2xf32>
    %57 = arith.maximumf %55, %56 : vector<16x2xf32>
    %58 = vector.extract_strided_slice %57 {offsets = [0, 0], sizes = [8, 2], strides = [1, 1]} : vector<16x2xf32> to vector<8x2xf32>
    %59 = vector.extract_strided_slice %57 {offsets = [8, 0], sizes = [8, 2], strides = [1, 1]} : vector<16x2xf32> to vector<8x2xf32>
    %c0_60 = arith.constant 0 : index
    %c0_61 = arith.constant 0 : index
    %60 = vector.load %arg1[%c0_60, %c0_61] : memref<8x2xf32, #tpu.memory_space<vmem>>, vector<8x2xf32>
    %cst_62 = arith.constant 5.000000e-01 : f32
    %61 = vector.broadcast %cst_62 : f32 to vector<8x2xf32>
    %62 = arith.mulf %61, %59 : vector<8x2xf32>
    %63 = math.exp %62 : vector<8x2xf32>
    %64 = arith.mulf %60, %63 : vector<8x2xf32>
    %65 = arith.addf %58, %64 : vector<8x2xf32>
    %c0_63 = arith.constant 0 : index
    %c0_64 = arith.constant 0 : index
    %66 = vector.load %arg32[%c0_63, %c0_64] : memref<8x2xf32, #tpu.memory_space<vmem>>, vector<8x2xf32>
    tpu.vector_store %arg32[%c0_63, %c0_64], %58 {strides = array<i32>} : memref<8x2xf32, #tpu.memory_space<vmem>>, vector<8x2xf32>,
    %c0_65 = arith.constant 0 : index
    %c0_66 = arith.constant 0 : index
    %67 = vector.load %arg33[%c0_65, %c0_66] : memref<8x2xf32, #tpu.memory_space<vmem>>, vector<8x2xf32>
    tpu.vector_store %arg33[%c0_65, %c0_66], %59 {strides = array<i32>} : memref<8x2xf32, #tpu.memory_space<vmem>>, vector<8x2xf32>,
    %c0_67 = arith.constant 0 : index
    %c0_68 = arith.constant 0 : index
    %68 = vector.load %arg34[%c0_67, %c0_68] : memref<8x2xf32, #tpu.memory_space<vmem>>, vector<8x2xf32>
    tpu.vector_store %arg34[%c0_67, %c0_68], %65 {strides = array<i32>} : memref<8x2xf32, #tpu.memory_space<vmem>>, vector<8x2xf32>,
    %c0_69 = arith.constant 0 : index
    %c0_70 = arith.constant 0 : index
    %69 = vector.load %arg21[%c0_69, %c0_70] : memref<128x8xf32, #tpu.memory_space<vmem>>, vector<128x8xf32>
    %cst_71 = arith.constant dense<0.000000e+00> : vector<128x2xf32>
    %70 = tpu.matmul %69, %65, %cst_71 {dimension_numbers = #tpu.dot_dimension_numbers<[1], [0], [0], [1], [0, 0, 1, 1], [], []>} : vector<128x8xf32>, vector<8x2xf32>, vector<128x2xf32> -> vector<128x2xf32>
    %c0_72 = arith.constant 0 : index
    %c0_73 = arith.constant 0 : index
    %71 = vector.load %arg22[%c0_72, %c0_73] : memref<2x32xf32, #tpu.memory_space<vmem>>, vector<2x32xf32>
    %cst_74 = arith.constant dense<0.000000e+00> : vector<128x32xf32>
    %72 = tpu.matmul %70, %71, %cst_74 {dimension_numbers = #tpu.dot_dimension_numbers<[1], [0], [0], [1], [0, 0, 1, 1], [], []>} : vector<128x2xf32>, vector<2x32xf32>, vector<128x32xf32> -> vector<128x32xf32>
    %c0_75 = arith.constant 0 : index
    %c0_76 = arith.constant 0 : index
    %73 = vector.load %arg23[%c0_75, %c0_76] : memref<128x32xf32, #tpu.memory_space<vmem>>, vector<128x32xf32>
    %74 = arith.mulf %72, %73 : vector<128x32xf32>
    %c0_77 = arith.constant 0 : index
    %c0_78 = arith.constant 0 : index
    %75 = vector.load %arg24[%c0_77, %c0_78] : memref<16x128xf32, #tpu.memory_space<vmem>>, vector<16x128xf32>
    %cst_79 = arith.constant dense<0.000000e+00> : vector<16x32xf32>
    %76 = tpu.matmul %75, %74, %cst_79 {dimension_numbers = #tpu.dot_dimension_numbers<[1], [0], [0], [1], [0, 0, 1, 1], [], []>} : vector<16x128xf32>, vector<128x32xf32>, vector<16x32xf32> -> vector<16x32xf32>
    %c0_80 = arith.constant 0 : index
    %c0_81 = arith.constant 0 : index
    %77 = vector.load %arg25[%c0_80, %c0_81] : memref<16x32xf32, #tpu.memory_space<vmem>>, vector<16x32xf32>
    %78 = arith.addf %76, %77 : vector<16x32xf32>
    %cst_82 = arith.constant 0.000000e+00 : f32
    %79 = vector.broadcast %cst_82 : f32 to vector<16x32xf32>
    %80 = arith.maximumf %78, %79 : vector<16x32xf32>
    %c0_83 = arith.constant 0 : index
    %c0_84 = arith.constant 0 : index
    %81 = vector.load %arg10[%c0_83, %c0_84] : memref<32x64xf32, #tpu.memory_space<vmem>>, vector<32x64xf32>
    %cst_85 = arith.constant dense<0.000000e+00> : vector<16x64xf32>
    %82 = tpu.matmul %80, %81, %cst_85 {dimension_numbers = #tpu.dot_dimension_numbers<[1], [0], [0], [1], [0, 0, 1, 1], [], []>} : vector<16x32xf32>, vector<32x64xf32>, vector<16x64xf32> -> vector<16x64xf32>
    %c0_86 = arith.constant 0 : index
    %c0_87 = arith.constant 0 : index
    %83 = vector.load %arg4[%c0_86, %c0_87] : memref<64x64xf32, #tpu.memory_space<vmem>>, vector<64x64xf32>
    %cst_88 = arith.constant dense<0.000000e+00> : vector<16x64xf32>
    %84 = tpu.matmul %82, %83, %cst_88 {dimension_numbers = #tpu.dot_dimension_numbers<[1], [0], [0], [1], [0, 0, 1, 1], [], []>} : vector<16x64xf32>, vector<64x64xf32>, vector<16x64xf32> -> vector<16x64xf32>
    %c0_89 = arith.constant 0 : index
    %c0_90 = arith.constant 0 : index
    %85 = vector.load %arg5[%c0_89, %c0_90] : memref<64x64xf32, #tpu.memory_space<vmem>>, vector<64x64xf32>
    %cst_91 = arith.constant dense<0.000000e+00> : vector<16x64xf32>
    %86 = tpu.matmul %82, %85, %cst_91 {dimension_numbers = #tpu.dot_dimension_numbers<[1], [0], [0], [1], [0, 0, 1, 1], [], []>} : vector<16x64xf32>, vector<64x64xf32>, vector<16x64xf32> -> vector<16x64xf32>
    %c0_92 = arith.constant 0 : index
    %c0_93 = arith.constant 0 : index
    %c0_94 = arith.constant 0 : index
    %87 = vector.load %arg26[%c0_92, %c0_93, %c0_94] : memref<3x16x16xf32, #tpu.memory_space<vmem>>, vector<1x16x16xf32>
    %88 = vector.shape_cast %87 : vector<1x16x16xf32> to vector<16x16xf32>
    %cst_95 = arith.constant dense<0.000000e+00> : vector<16x64xf32>
    %89 = tpu.matmul %88, %82, %cst_95 {dimension_numbers = #tpu.dot_dimension_numbers<[1], [0], [0], [1], [0, 0, 1, 1], [], []>} : vector<16x16xf32>, vector<16x64xf32>, vector<16x64xf32> -> vector<16x64xf32>
    %c1_96 = arith.constant 1 : index
    %c0_97 = arith.constant 0 : index
    %c0_98 = arith.constant 0 : index
    %90 = vector.load %arg26[%c1_96, %c0_97, %c0_98] : memref<3x16x16xf32, #tpu.memory_space<vmem>>, vector<1x16x16xf32>
    %91 = vector.shape_cast %90 : vector<1x16x16xf32> to vector<16x16xf32>
    %cst_99 = arith.constant dense<0.000000e+00> : vector<16x64xf32>
    %92 = tpu.matmul %91, %84, %cst_99 {dimension_numbers = #tpu.dot_dimension_numbers<[1], [0], [0], [1], [0, 0, 1, 1], [], []>} : vector<16x16xf32>, vector<16x64xf32>, vector<16x64xf32> -> vector<16x64xf32>
    %93 = arith.addf %89, %92 : vector<16x64xf32>
    %c2_100 = arith.constant 2 : index
    %c0_101 = arith.constant 0 : index
    %c0_102 = arith.constant 0 : index
    %94 = vector.load %arg26[%c2_100, %c0_101, %c0_102] : memref<3x16x16xf32, #tpu.memory_space<vmem>>, vector<1x16x16xf32>
    %95 = vector.shape_cast %94 : vector<1x16x16xf32> to vector<16x16xf32>
    %cst_103 = arith.constant dense<0.000000e+00> : vector<16x64xf32>
    %96 = tpu.matmul %95, %86, %cst_103 {dimension_numbers = #tpu.dot_dimension_numbers<[1], [0], [0], [1], [0, 0, 1, 1], [], []>} : vector<16x16xf32>, vector<16x64xf32>, vector<16x64xf32> -> vector<16x64xf32>
    %97 = arith.addf %93, %96 : vector<16x64xf32>
    %c0_104 = arith.constant 0 : index
    %c0_105 = arith.constant 0 : index
    %98 = vector.load %arg27[%c0_104, %c0_105] : memref<16x1xf32, #tpu.memory_space<vmem>>, vector<16x1xf32>
    %99 = vector.broadcast %98 : vector<16x1xf32> to vector<16x64xf32>
    %100 = arith.addf %97, %99 : vector<16x64xf32>
    %cst_106 = arith.constant 0.000000e+00 : f32
    %101 = vector.broadcast %cst_106 : f32 to vector<16x64xf32>
    %102 = arith.maximumf %100, %101 : vector<16x64xf32>
    %c0_107 = arith.constant 0 : index
    %c0_108 = arith.constant 0 : index
    %103 = vector.load %arg11[%c0_107, %c0_108] : memref<64x128xf32, #tpu.memory_space<vmem>>, vector<64x128xf32>
    %cst_109 = arith.constant dense<0.000000e+00> : vector<16x128xf32>
    %104 = tpu.matmul %102, %103, %cst_109 {dimension_numbers = #tpu.dot_dimension_numbers<[1], [0], [0], [1], [0, 0, 1, 1], [], []>} : vector<16x64xf32>, vector<64x128xf32>, vector<16x128xf32> -> vector<16x128xf32>
    %c0_110 = arith.constant 0 : index
    %c0_111 = arith.constant 0 : index
    %105 = vector.load %arg2[%c0_110, %c0_111] : memref<128x128xf32, #tpu.memory_space<vmem>>, vector<128x128xf32>
    %cst_112 = arith.constant dense<0.000000e+00> : vector<16x128xf32>
    %106 = tpu.matmul %104, %105, %cst_112 {dimension_numbers = #tpu.dot_dimension_numbers<[1], [0], [0], [1], [0, 0, 1, 1], [], []>} : vector<16x128xf32>, vector<128x128xf32>, vector<16x128xf32> -> vector<16x128xf32>
    %c0_113 = arith.constant 0 : index
    %c0_114 = arith.constant 0 : index
    %107 = vector.load %arg3[%c0_113, %c0_114] : memref<128x128xf32, #tpu.memory_space<vmem>>, vector<128x128xf32>
    %cst_115 = arith.constant dense<0.000000e+00> : vector<16x128xf32>
    %108 = tpu.matmul %104, %107, %cst_115 {dimension_numbers = #tpu.dot_dimension_numbers<[1], [0], [0], [1], [0, 0, 1, 1], [], []>} : vector<16x128xf32>, vector<128x128xf32>, vector<16x128xf32> -> vector<16x128xf32>
    %c0_116 = arith.constant 0 : index
    %c0_117 = arith.constant 0 : index
    %c0_118 = arith.constant 0 : index
    %109 = vector.load %arg28[%c0_116, %c0_117, %c0_118] : memref<3x8x16xf32, #tpu.memory_space<vmem>>, vector<1x8x16xf32>
    %110 = vector.shape_cast %109 : vector<1x8x16xf32> to vector<8x16xf32>
    %cst_119 = arith.constant dense<0.000000e+00> : vector<8x128xf32>
    %111 = tpu.matmul %110, %104, %cst_119 {dimension_numbers = #tpu.dot_dimension_numbers<[1], [0], [0], [1], [0, 0, 1, 1], [], []>} : vector<8x16xf32>, vector<16x128xf32>, vector<8x128xf32> -> vector<8x128xf32>
    %c1_120 = arith.constant 1 : index
    %c0_121 = arith.constant 0 : index
    %c0_122 = arith.constant 0 : index
    %112 = vector.load %arg28[%c1_120, %c0_121, %c0_122] : memref<3x8x16xf32, #tpu.memory_space<vmem>>, vector<1x8x16xf32>
    %113 = vector.shape_cast %112 : vector<1x8x16xf32> to vector<8x16xf32>
    %cst_123 = arith.constant dense<0.000000e+00> : vector<8x128xf32>
    %114 = tpu.matmul %113, %106, %cst_123 {dimension_numbers = #tpu.dot_dimension_numbers<[1], [0], [0], [1], [0, 0, 1, 1], [], []>} : vector<8x16xf32>, vector<16x128xf32>, vector<8x128xf32> -> vector<8x128xf32>
    %115 = arith.addf %111, %114 : vector<8x128xf32>
    %c2_124 = arith.constant 2 : index
    %c0_125 = arith.constant 0 : index
    %c0_126 = arith.constant 0 : index
    %116 = vector.load %arg28[%c2_124, %c0_125, %c0_126] : memref<3x8x16xf32, #tpu.memory_space<vmem>>, vector<1x8x16xf32>
    %117 = vector.shape_cast %116 : vector<1x8x16xf32> to vector<8x16xf32>
    %cst_127 = arith.constant dense<0.000000e+00> : vector<8x128xf32>
    %118 = tpu.matmul %117, %108, %cst_127 {dimension_numbers = #tpu.dot_dimension_numbers<[1], [0], [0], [1], [0, 0, 1, 1], [], []>} : vector<8x16xf32>, vector<16x128xf32>, vector<8x128xf32> -> vector<8x128xf32>
    %119 = arith.addf %115, %118 : vector<8x128xf32>
    %c0_128 = arith.constant 0 : index
    %c0_129 = arith.constant 0 : index
    %120 = vector.load %arg29[%c0_128, %c0_129] : memref<8x1xf32, #tpu.memory_space<vmem>>, vector<8x1xf32>
    %121 = vector.broadcast %120 : vector<8x1xf32> to vector<8x128xf32>
    %122 = arith.addf %119, %121 : vector<8x128xf32>
    %cst_130 = arith.constant 0.000000e+00 : f32
    %123 = vector.broadcast %cst_130 : f32 to vector<8x128xf32>
    %124 = arith.maximumf %122, %123 : vector<8x128xf32>
    %c0_131 = arith.constant 0 : index
    %c0_132 = arith.constant 0 : index
    %125 = vector.load %arg6[%c0_131, %c0_132] : memref<128x128xf32, #tpu.memory_space<vmem>>, vector<128x128xf32>
    %cst_133 = arith.constant dense<0.000000e+00> : vector<8x128xf32>
    %126 = tpu.matmul %124, %125, %cst_133 {dimension_numbers = #tpu.dot_dimension_numbers<[1], [0], [0], [1], [0, 0, 1, 1], [], []>} : vector<8x128xf32>, vector<128x128xf32>, vector<8x128xf32> -> vector<8x128xf32>
    %c0_134 = arith.constant 0 : index
    %c0_135 = arith.constant 0 : index
    %127 = vector.load %arg7[%c0_134, %c0_135] : memref<128x128xf32, #tpu.memory_space<vmem>>, vector<128x128xf32>
    %cst_136 = arith.constant dense<0.000000e+00> : vector<8x128xf32>
    %128 = tpu.matmul %124, %127, %cst_136 {dimension_numbers = #tpu.dot_dimension_numbers<[1], [0], [0], [1], [0, 0, 1, 1], [], []>} : vector<8x128xf32>, vector<128x128xf32>, vector<8x128xf32> -> vector<8x128xf32>
    %c0_137 = arith.constant 0 : index
    %c0_138 = arith.constant 0 : index
    %c0_139 = arith.constant 0 : index
    %129 = vector.load %arg30[%c0_137, %c0_138, %c0_139] : memref<3x3x8xf32, #tpu.memory_space<vmem>>, vector<1x3x8xf32>
    %130 = vector.shape_cast %129 : vector<1x3x8xf32> to vector<3x8xf32>
    %cst_140 = arith.constant dense<0.000000e+00> : vector<3x128xf32>
    %131 = tpu.matmul %130, %124, %cst_140 {dimension_numbers = #tpu.dot_dimension_numbers<[1], [0], [0], [1], [0, 0, 1, 1], [], []>} : vector<3x8xf32>, vector<8x128xf32>, vector<3x128xf32> -> vector<3x128xf32>
    %c1_141 = arith.constant 1 : index
    %c0_142 = arith.constant 0 : index
    %c0_143 = arith.constant 0 : index
    %132 = vector.load %arg30[%c1_141, %c0_142, %c0_143] : memref<3x3x8xf32, #tpu.memory_space<vmem>>, vector<1x3x8xf32>
    %133 = vector.shape_cast %132 : vector<1x3x8xf32> to vector<3x8xf32>
    %cst_144 = arith.constant dense<0.000000e+00> : vector<3x128xf32>
    %134 = tpu.matmul %133, %126, %cst_144 {dimension_numbers = #tpu.dot_dimension_numbers<[1], [0], [0], [1], [0, 0, 1, 1], [], []>} : vector<3x8xf32>, vector<8x128xf32>, vector<3x128xf32> -> vector<3x128xf32>
    %135 = arith.addf %131, %134 : vector<3x128xf32>
    %c2_145 = arith.constant 2 : index
    %c0_146 = arith.constant 0 : index
    %c0_147 = arith.constant 0 : index
    %136 = vector.load %arg30[%c2_145, %c0_146, %c0_147] : memref<3x3x8xf32, #tpu.memory_space<vmem>>, vector<1x3x8xf32>
    %137 = vector.shape_cast %136 : vector<1x3x8xf32> to vector<3x8xf32>
    %cst_148 = arith.constant dense<0.000000e+00> : vector<3x128xf32>
    %138 = tpu.matmul %137, %128, %cst_148 {dimension_numbers = #tpu.dot_dimension_numbers<[1], [0], [0], [1], [0, 0, 1, 1], [], []>} : vector<3x8xf32>, vector<8x128xf32>, vector<3x128xf32> -> vector<3x128xf32>
    %139 = arith.addf %135, %138 : vector<3x128xf32>
    %c0_149 = arith.constant 0 : index
    %c0_150 = arith.constant 0 : index
    %140 = vector.load %arg31[%c0_149, %c0_150] : memref<3x128xf32, #tpu.memory_space<vmem>>, vector<3x128xf32>
    tpu.vector_store %arg31[%c0_149, %c0_150], %139 {strides = array<i32>} : memref<3x128xf32, #tpu.memory_space<vmem>>, vector<3x128xf32>,
    return
  }
}

</mosaic_0001>

<bundles_post_ra>
// kernel: mesh_vae_forward.1
= control target key start
LH: loop header
LB: loop body
LE: loop exit
PB: predicated region body
PF: predicated region fallthrough
CT: control target
= control target key end

     0   :  { %s5265_s6 = smov 1   ;;  %s5266_s10 = smov 2   ;;  %s6078_s0 = inlined_call_operand.smem [shape: u32[35], index: -1, kind: input, shape index: {}] }
   0x1   :  { %s5311_s5 = sld [smem:[%s6078_s0]]   ;;  %s5267_s14 = smov 3  }
   0x2   :  { %s5316_s9 = sld [smem:[%s6078_s0 + %s5265_s6]]   ;;  %s5268_s18 = smov 4  }
   0x3   :  { %s5321_s13 = sld [smem:[%s6078_s0 + %s5266_s10]]   ;;  %s5269_s22 = smov 5  }
   0x4   :  { %s5326_s17 = sld [smem:[%s6078_s0 + %s5267_s14]]   ;;  %s5270_s26 = smov 6  }
   0x5   :  { %s5331_s21 = sld [smem:[%s6078_s0 + %s5268_s18]]   ;;  %s5271_s30 = smov 7  }
   0x6   :  { %s5336_s25 = sld [smem:[%s6078_s0 + %s5269_s22]]   ;;  %s5272_s4 = smov 8  }
   0x7   :  { %s5341_s29 = sld [smem:[%s6078_s0 + %s5270_s26]]   ;;  %s5273_s10 = smov 9  }
   0x8   :  { %6094 = sst [smem:[#allocation5_spill]] %s5316_s9  ;;  %s5274_s15 = smov 10  }
   0x9   :  { %s5346_s3 = sld [smem:[%s6078_s0 + %s5271_s30]]   ;;  %s5275_s20 = smov 11  }
   0xa   :  { %s5351_s8 = sld [smem:[%s6078_s0 + %s5272_s4]]   ;;  %s5276_s26 = smov 12  }
   0xb   :  { %s5356_s14 = sld [smem:[%s6078_s0 + %s5273_s10]]   ;;  %s5277_s1 = smov 13  }
   0xc   :  { %s5361_s19 = sld [smem:[%s6078_s0 + %s5274_s15]]   ;;  %s5278_s7 = smov 14  }
   0xd   :  { %6095 = sst [smem:[#allocation6_spill]] %s5341_s29  ;;  %s5279_s15 = smov 15  }
   0xe   :  { %s5366_s24 = sld [smem:[%s6078_s0 + %s5275_s20]]   ;;  %s5280_s22 = smov 16  }
   0xf   :  { %6096 = sst [smem:[#allocation7_spill]] %s5346_s3  ;;  %s5281_s28 = smov 17  }
  0x10   :  { %s5371_s30 = sld [smem:[%s6078_s0 + %s5276_s26]]  }
  0x11   :  { %s5376_s6 = sld [smem:[%s6078_s0 + %s5277_s1]]  }
  0x12   :  { %6097 = sst [smem:[#allocation8_spill]] %s5361_s19 }
  0x13   :  { %s5381_s12 = sld [smem:[%s6078_s0 + %s5278_s7]]   ;;  %s5282_s7 = smov 18  }
  0x14   :  { %6098 = sst [smem:[#allocation9_spill]] %s5366_s24 }
  0x15   :  { %s5386_s20 = sld [smem:[%s6078_s0 + %s5279_s15]]   ;;  %s5283_s15 = smov 19  }
  0x16   :  { %s5391_s27 = sld [smem:[%s6078_s0 + %s5280_s22]]   ;;  %s5284_s22 = smov 20  }
  0x17   :  { %s5396_s4 = sld [smem:[%s6078_s0 + %s5281_s28]]   ;;  %s5285_s28 = smov 21  }
  0x18   :  { %s5401_s29 = sld [smem:[%s6078_s0 + %s5282_s7]]   ;;  %s5286_s7 = smov 22  }
  0x19   :  { %s5406_s3 = sld [smem:[%s6078_s0 + %s5283_s15]]   ;;  %s5287_s15 = smov 23  }
  0x1a   :  { %s5411_s24 = sld [smem:[%s6078_s0 + %s5284_s22]]   ;;  %s5288_s22 = smov 24  }
  0x1b   :  { %s5416_s19 = sld [smem:[%s6078_s0 + %s5285_s28]]   ;;  %s5289_s28 = smov 25  }
  0x1c   :  { %6099 = sst [smem:[#allocation10_spill]] %s5391_s27 }
  0x1d   :  { %s5421_s9 = sld [smem:[%s6078_s0 + %s5286_s7]]   ;;  %s5290_s7 = smov 26  }
  0x1e   :  { %6100 = sst [smem:[#allocation11_spill]] %s5401_s29 }
  0x1f   :  { %6101 = sst [smem:[#allocation12_spill]] %s5406_s3 }
  0x20   :  { %6102 = sst [smem:[#allocation13_spill]] %s5411_s24 }
  0x21   :  { %6103 = sst [smem:[#allocation14_spill]] %s5416_s19 }
  0x22   :  { %s5426_s29 = sld [smem:[%s6078_s0 + %s5287_s15]]   ;;  %s5291_s15 = smov 27  }
  0x23   :  { %6104 = sst [smem:[#allocation15_spill]] %s5421_s9 }
  0x24   :  { %s5431_s24 = sld [smem:[%s6078_s0 + %s5288_s22]]   ;;  %s5292_s22 = smov 28  }
  0x25   :  { %s5436_s19 = sld [smem:[%s6078_s0 + %s5289_s28]]   ;;  %s5293_s28 = smov 29  }
  0x26   :  { %s5441_s9 = sld [smem:[%s6078_s0 + %s5290_s7]]   ;;  %s5294_s7 = smov 30  }
  0x28   :  { %6105 = sst [smem:[#allocation16_spill]] %s5426_s29 }
  0x29   :  { %s5446_s29 = sld [smem:[%s6078_s0 + %s5291_s15]]   ;;  %s5295_s15 = smov 31  }
  0x2a   :  { %6106 = sst [smem:[#allocation17_spill]] %s5431_s24 }
  0x2b   :  { %6107 = sst [smem:[#allocation18_spill]] %s5436_s19 }
  0x2c   :  { %6108 = sst [smem:[#allocation19_spill]] %s5441_s9 }
  0x2d   :  { %s5451_s24 = sld [smem:[%s6078_s0 + %s5292_s22]]   ;;  %s5296_s22 = smov 32  }
  0x2e   :  { %s5456_s19 = sld [smem:[%s6078_s0 + %s5293_s28]]   ;;  %s5297_s28 = smov 33  }
  0x2f   :  { %s5461_s9 = sld [smem:[%s6078_s0 + %s5294_s7]]   ;;  %s5298_s7 = smov 34  }
  0x30   :  { %s5466_s3 = sld [smem:[%s6078_s0 + %s5295_s15]]  }
  0x31   :  { %s5476_s27 = sld [smem:[%s6078_s0 + %s5297_s28]]  }
  0x33   :  { %6109 = sst [smem:[#allocation20_spill]] %s5451_s24 }
  0x34   :  { %s5471_s24 = sld [smem:[%s6078_s0 + %s5296_s22]]  }
  0x35   :  { %6110 = sst [smem:[#allocation21_spill]] %s5461_s9 }
  0x36   :  { %s5481_s9 = sld [smem:[%s6078_s0 + %s5298_s7]]  }
  0x37   :  { %v154_v0 = vld [vmem:[%s5321_s13 + $0x78] sm:$0xff]  ;;  %v5299_v2 = vmov 0.0   ;;  %v153_v3 = vld [vmem:[%s5321_s13 + $0x70] sm:$0xff]  ;;  %v152_v5 = vld [vmem:[%s5321_s13 + $0x68] sm:$0xff] }
  0x38   :  { %v240_v1 = vld [vmem:[%s5326_s17 + $0x78] sm:$0xff]  ;;  %4549 = vmatprep.subr.mxu0 %v5299_v2  ;;  %4584 = vmatprep.subr.mxu1 %v5299_v2  ;;  %v239_v4 = vld [vmem:[%s5326_s17 + $0x70] sm:$0xff]  ;;  %v238_v6 = vld [vmem:[%s5326_s17 + $0x68] sm:$0xff] }
  0x39   :  { %4550 = vmatpush3.msra.mxu0 %v154_v0  ;;  %4585 = vmatpush3.msra.mxu1 %v240_v1  ;;  %v151_v7 = vld [vmem:[%s5321_s13 + $0x60] sm:$0xff]  ;;  %v150_v9 = vld [vmem:[%s5321_s13 + $0x58] sm:$0xff]  ;;  %v149_v11 = vld [vmem:[%s5321_s13 + $0x50] sm:$0xff] }
  0x3a   :  { %4551 = vmatprep.subr.mxu0 %v5299_v2  ;;  %4586 = vmatprep.subr.mxu1 %v5299_v2  ;;  %v237_v8 = vld [vmem:[%s5326_s17 + $0x60] sm:$0xff]  ;;  %v236_v10 = vld [vmem:[%s5326_s17 + $0x58] sm:$0xff]  ;;  %v235_v12 = vld [vmem:[%s5326_s17 + $0x50] sm:$0xff] }
  0x3b   :  { %4552 = vmatpush3.msra.mxu0 %v153_v3  ;;  %4587 = vmatpush3.msra.mxu1 %v239_v4  ;;  %v148_v13 = vld [vmem:[%s5321_s13 + $0x48] sm:$0xff] }
  0x3c   :  { %4553 = vmatprep.subr.mxu0 %v5299_v2  ;;  %4588 = vmatprep.subr.mxu1 %v5299_v2  ;;  %v234_v14 = vld [vmem:[%s5326_s17 + $0x48] sm:$0xff] }
  0x3d   :  { %4554 = vmatpush3.msra.mxu0 %v152_v5  ;;  %4589 = vmatpush3.msra.mxu1 %v238_v6 }
  0x3e   :  { %4555 = vmatprep.subr.mxu0 %v5299_v2  ;;  %4590 = vmatprep.subr.mxu1 %v5299_v2 }
  0x3f   :  { %4556 = vmatpush3.msra.mxu0 %v151_v7  ;;  %4591 = vmatpush3.msra.mxu1 %v237_v8 }
  0x40   :  { %4557 = vmatprep.subr.mxu0 %v5299_v2  ;;  %4592 = vmatprep.subr.mxu1 %v5299_v2 }
  0x41   :  { %4558 = vmatpush3.msra.mxu0 %v150_v9  ;;  %4593 = vmatpush3.msra.mxu1 %v236_v10 }
  0x42   :  { %4559 = vmatprep.subr.mxu0 %v5299_v2  ;;  %4594 = vmatprep.subr.mxu1 %v5299_v2 }
  0x43   :  { %75 = vsyncpa [#allocation3], 0  ;;  %4560 = vmatpush3.msra.mxu0 %v149_v11  ;;  %4595 = vmatpush3.msra.mxu1 %v235_v12  ;;  %v147_v15 = vld [vmem:[%s5321_s13 + $0x40] sm:$0xff]  ;;  %v146_v17 = vld [vmem:[%s5321_s13 + $0x38] sm:$0xff]  ;;  %vm5300_vm0 = vmmov 0   ;;  %vm318_vm1 = vcmask 1042432  }
  0x44   :  { %4561 = vmatprep.subr.mxu0 %v5299_v2  ;;  %4596 = vmatprep.subr.mxu1 %v5299_v2  ;;  %v233_v16 = vld [vmem:[%s5326_s17 + $0x40] sm:$0xff]  ;;  %v232_v18 = vld [vmem:[%s5326_s17 + $0x38] sm:$0xff]  ;;  %v145_v19 = vld [vmem:[%s5321_s13 + $0x30] sm:$0xff]  ;;  %vm314_vm2 = vcmask 23552   ;;  %v5301_v36 = vmov 0   ;;  %vm649_vm3 = vcmask 523264  }
  0x45   :  { %4562 = vmatpush3.msra.mxu0 %v148_v13  ;;  %4597 = vmatpush3.msra.mxu1 %v234_v14  ;;  %v231_v20 = vld [vmem:[%s5326_s17 + $0x30] sm:$0xff]  ;;  %v144_v21 = vld [vmem:[%s5321_s13 + $0x28] sm:$0xff]  ;;  %v143_v23 = vld [vmem:[%s5321_s13 + $0x20] sm:$0xff]  ;;  %vm806_vm4 = vcmask 64512   ;;  %s6111_s0 = sld [smem:[#allocation10_spill]]  ;;  %vm1192_vm5 = vcmask 130048  }
  0x46   :  { %4563 = vmatprep.subr.mxu0 %v5299_v2  ;;  %4598 = vmatprep.subr.mxu1 %v5299_v2  ;;  %v230_v22 = vld [vmem:[%s5326_s17 + $0x28] sm:$0xff]  ;;  %v229_v24 = vld [vmem:[%s5326_s17 + $0x20] sm:$0xff]  ;;  %v142_v25 = vld [vmem:[%s5321_s13 + $0x18] sm:$0xff]  ;;  %vm1582_vm6 = vcmask 261120   ;;  %vm2265_vm7 = vcmask 1041408   ;;  %vm2003_vm8 = vcmask 15360  }
  0x47   :  { %4564 = vmatpush3.msra.mxu0 %v147_v15  ;;  %4599 = vmatpush3.msra.mxu1 %v233_v16  ;;  %v228_v26 = vld [vmem:[%s5326_s17 + $0x18] sm:$0xff]  ;;  %v141_v27 = vld [vmem:[%s5321_s13 + $0x10] sm:$0xff]  ;;  %v140_v29 = vld [vmem:[%s5321_s13 + $0x8] sm:$0xff] }
  0x48   :  { %4565 = vmatprep.subr.mxu0 %v5299_v2  ;;  %4600 = vmatprep.subr.mxu1 %v5299_v2  ;;  %v227_v28 = vld [vmem:[%s5326_s17 + $0x10] sm:$0xff]  ;;  %v226_v30 = vld [vmem:[%s5326_s17 + $0x8] sm:$0xff]  ;;  %v139_v31 = vld [vmem:[%s5321_s13] sm:$0xff] }
  0x49   :  { %4566 = vmatpush3.msra.mxu0 %v146_v17  ;;  %4601 = vmatpush3.msra.mxu1 %v232_v18  ;;  %v138_v32 = vld [vmem:[%s5311_s5] sm:$0x7]  ;;  %v570_v37 = vld [vmem:[%s5351_s8 + $0x78] sm:$0xff]  ;;  %v569_v38 = vld [vmem:[%s5351_s8 + $0x70] sm:$0xff]  ;;  %s6112_s5 = sld [smem:[#allocation12_spill]] }
  0x4a   :  { %4567 = vmatprep.subr.mxu0 %v5299_v2  ;;  %4602 = vmatprep.subr.mxu1 %v5299_v2  ;;  %v225_v33 = vld [vmem:[%s5326_s17] sm:$0xff]  ;;  %v568_v40 = vld [vmem:[%s5351_s8 + $0x68] sm:$0xff]  ;;  %v566_v43 = vld [vmem:[%s5351_s8 + $0x58] sm:$0xff] }
  0x4b   :  { %4568 = vmatpush3.msra.mxu0 %v145_v19  ;;  %4603 = vmatpush3.msra.mxu1 %v231_v20  ;;  %v311_v34 = vld [vmem:[%s5371_s30] sm:$0xff]  ;;  %v565_v44 = vld [vmem:[%s5351_s8 + $0x50] sm:$0xff]  ;;  %v3038_v45 = vld [vmem:[%s5446_s29 + $0x8] sm:$0xff] }
  0x4c   :  { %4569 = vmatprep.subr.mxu0 %v5299_v2  ;;  %4604 = vmatprep.subr.mxu1 %v5299_v2  ;;  %v547_v35 = vld [vmem:[%s5376_s6] sm:$0xff]  ;;  %v564_v46 = vld [vmem:[%s5351_s8 + $0x48] sm:$0xff]  ;;  %v562_v48 = vld [vmem:[%s5351_s8 + $0x38] sm:$0xff]  ;;  %s6120_s6 = sld [smem:[#allocation8_spill]] }
  0x4d   :  { %4570 = vmatpush3.msra.mxu0 %v144_v21  ;;  %4605 = vmatpush3.msra.mxu1 %v230_v22  ;;  %v1055_v39 = vld [vmem:[%s5386_s20] sm:$0xff]  ;;  %v561_v49 = vld [vmem:[%s5351_s8 + $0x30] sm:$0xff]  ;;  %v4015_v50 = vld [vmem:[%s5371_s30 + $0x8] sm:$0xff] }
  0x4e   :  { %4571 = vmatprep.subr.mxu0 %v5299_v2  ;;  %4606 = vmatprep.subr.mxu1 %v5299_v2  ;;  %v567_v41 = vld [vmem:[%s5351_s8 + $0x60] sm:$0xff]  ;;  %v4020_v54 = vld [vmem:[%s5371_s30 + $0x10] sm:$0xff]  ;;  %v560_v56 = vld [vmem:[%s5351_s8 + $0x28] sm:$0xff]  ;;  %s6117_s30 = sld [smem:[#allocation5_spill]] }
  0x4f   :  { %4572 = vmatpush3.msra.mxu0 %v143_v23  ;;  %4607 = vmatpush3.msra.mxu1 %v229_v24  ;;  %v1908_v42 = vld [vmem:[%s5396_s4] sm:$0xff]  ;;  %v558_v60 = vld [vmem:[%s5351_s8 + $0x18] sm:$0xff]  ;;  %v557_v61 = vld [vmem:[%s5351_s8 + $0x10] sm:$0xff] }
  0x50   :  { %4573 = vmatprep.subr.mxu0 %v5299_v2  ;;  %4608 = vmatprep.subr.mxu1 %v5299_v2  ;;  %v563_v47 = vld [vmem:[%s5351_s8 + $0x40] sm:$0xff]  ;;  %v556_v62 = vld [vmem:[%s5351_s8 + $0x8] sm:$0xff]  ;;  %v648_v0 = vld [vmem:[%s5331_s21 + $0x38] sm:$0xff] }
  0x51   :  { %4574 = vmatpush3.msra.mxu0 %v142_v25  ;;  %4609 = vmatpush3.msra.mxu1 %v228_v26  ;;  %v559_v58 = vld [vmem:[%s5351_s8 + $0x20] sm:$0xff]  ;;  %v647_v1 = vld [vmem:[%s5331_s21 + $0x30] sm:$0xff]  ;;  %v646_v3 = vld [vmem:[%s5331_s21 + $0x28] sm:$0xff] }
  0x52   :  { %4575 = vmatprep.subr.mxu0 %v5299_v2  ;;  %4610 = vmatprep.subr.mxu1 %v5299_v2  ;;  %v555_v63 = vld [vmem:[%s5351_s8] sm:$0xff]  ;;  %v644_v5 = vld [vmem:[%s5331_s21 + $0x18] sm:$0xff]  ;;  %v643_v6 = vld [vmem:[%s5331_s21 + $0x10] sm:$0xff]  ;;  %s6114_s8 = sld [smem:[#allocation13_spill]] }
  0x53   :  { %4576 = vmatpush3.msra.mxu0 %v141_v27  ;;  %4611 = vmatpush3.msra.mxu1 %v227_v28  ;;  %v645_v4 = vld [vmem:[%s5331_s21 + $0x20] sm:$0xff]  ;;  %v642_v7 = vld [vmem:[%s5331_s21 + $0x8] sm:$0xff]  ;;  %v730_v18 = vld [vmem:[%s5336_s25 + $0x38] sm:$0xff] }
  0x54   :  { %4577 = vmatprep.subr.mxu0 %v5299_v2  ;;  %4612 = vmatprep.subr.mxu1 %v5299_v2  ;;  %v641_v8 = vld [vmem:[%s5331_s21] sm:$0xff]  ;;  %v729_v20 = vld [vmem:[%s5336_s25 + $0x30] sm:$0xff]  ;;  %v728_v22 = vld [vmem:[%s5336_s25 + $0x28] sm:$0xff] }
  0x55   :  { %4578 = vmatpush3.msra.mxu0 %v140_v29  ;;  %4581 = vmatprep.mubr.msk.f32.mxu0 %vm5300_vm0, %v5299_v2  ;;  %v727_v23 = vld [vmem:[%s5336_s25 + $0x20] sm:$0xff]  ;;  %v726_v24 = vld [vmem:[%s5336_s25 + $0x18] sm:$0xff]  ;;  %v725_v25 = vld [vmem:[%s5336_s25 + $0x10] sm:$0xff] }
  0x56   :  { %4579 = vmatprep.subr.mxu0 %v5299_v2  ;;  %4613 = vmatpush3.msra.mxu1 %v226_v30  ;;  %v724_v26 = vld [vmem:[%s5336_s25 + $0x8] sm:$0xff]  ;;  %v723_v27 = vld [vmem:[%s5336_s25] sm:$0xff]  ;;  %v4025_v28 = vld [vmem:[%s5381_s12 + $0x10] sm:$0xff] }
  0x57   :  { %4580 = vmatpush3.msra.mxu0 %v139_v31  ;;  %4614 = vmatprep.subr.mxu1 %v5299_v2  ;;  %v801_v29 = vld [vmem:[%s5381_s12] sm:$0xff]  ;;  %v802_v30 = vld [vmem:[%s5381_s12 + $0x8] sm:$0xff] }
  0x58   :  { %4582 = vmatmul.mubr.f32.vlgmr.msra.gmra.mxu0 %v138_v32  ;;  %4615 = vmatpush3.msra.mxu1 %v225_v33  ;;  %v1056_v31 = vld [vmem:[%s5386_s20 + $0x8] sm:$0xff]  ;;  %v3037_v33 = vld [vmem:[%s5446_s29] sm:$0xff]  ;;  %s6113_s29 = sld [smem:[#allocation11_spill]] }
  0x59   :  { %4616 = vmatprep.mubr.msk.f32.mxu1 %vm5300_vm0, %v5299_v2  ;;  %4619 = vmatprep.subr.mxu0 %v5299_v2  ;;  %s6122_s20 = sld [smem:[#allocation19_spill]] }
  0x5a   :  { %4617 = vmatmul.mubr.f32.vlgmr.msra.gmra.mxu1 %v138_v32  ;;  %4624 = vmatprep.subr.mxu1 %v5299_v2 }
  0x5b   :  { %4621 = vmatprep.mubr.msk.f32.mxu0 %vm5300_vm0, %v5299_v2  ;;  %4626 = vmatprep.mubr.msk.f32.mxu1 %vm5300_vm0, %v5299_v2 }
  0x5c   :  { %4625 = vmatpush3.msk.msra.mxu1 %vm318_vm1, %v138_v32  ;;  %5239 = vset.pattern.permute.xlu0 %v5301_v36  ;;  %v1909_v32 = vld [vmem:[%s5396_s4 + $0x8] sm:$0xff]  ;;  %s5302_s4 = smov [#allocation2]  }
  0x5d   :  { %4634 = vmatprep.subr.mxu1 %v5299_v2  ;;  %5240 = vset.pattern.permute.xlu1 %v5301_v36  ;;  %v4026_v36 = vld [vmem:[%s5381_s12 + $0x18] sm:$0xff]  ;;  %s3961_s15 = sshll.u32 %s5302_s4, 4  ;;  %s3962_s15 = int_to_ptr.vmem [resolvable:$true] %s3961_s15 }
  0x5e   :  { %4627 = vmatmul.mubr.msk.f32.vlgmr.msra.gmra.mxu1 %vm314_vm2, %v311_v34  ;;  %550 = vperm.xlu0 %5239, %v547_v35   ;;  %v3549_v34 = vld [vmem:[%s5456_s19] sm:$0xff]  ;;  %s6116_s19 = sld [smem:[#allocation15_spill]]  ;;  %s5243_s16 = scalar_lea.vmem %s3962_s15, 64 }
  0x5f   :  { %4666 = vmatprep.mubr.msk.f32.mxu1 %vm5300_vm0, %v5299_v2  ;;  %4635 = vmatpush3.msra.mxu1 %v570_v37  ;;  %v4031_v37 = vld [vmem:[%s5381_s12 + $0x20] sm:$0xff]  ;;  %p5244_p0 = scmp.ne.s32.totalorder %s3962_s15, %s5243_s16  ;;  %p5248_p1 = scmp.lt.s32.totalorder %s3962_s15, %s3962_s15 }
  0x60   :  { %4636 = vmatprep.subr.mxu1 %v5299_v2  ;;  %1064 = vperm.xlu1 %5240, %v1056_v31   ;;  %v1185_v31 = vld [vmem:[%s6111_s0 + $0xc8] sm:$0xff]  ;;  %p5249_p2 = scmp.lt.s32.totalorder %s5243_s16, %s5243_s16 }
  0x61   :  { %4637 = vmatpush3.msra.mxu1 %v569_v38 }
  0x62   :  { %4638 = vmatprep.subr.mxu1 %v5299_v2  ;;  %1059 = vperm.xlu0 %5239, %v1055_v39   ;;  %p5250_p3 = por %p5249_p2, %p5248_p1 }
  0x63   :  { %4639 = vmatpush3.msra.mxu1 %v568_v40  ;;  %v4032_v40 = vld [vmem:[%s5381_s12 + $0x28] sm:$0xff]  ;;  %s6121_s12 = sld [smem:[#allocation18_spill]] }
  0x64   :  { %4640 = vmatprep.subr.mxu1 %v5299_v2  ;;  %1917 = vperm.xlu1 %5240, %v1909_v32   ;;  %v1186_v32 = vld [vmem:[%s6111_s0 + $0xd0] sm:$0xff]  ;;  %p5251_p4 = pnand %p5250_p3, %p5244_p0 }
  0x65   :  { %4641 = vmatpush3.msra.mxu1 %v567_v41 }
  0x66   :  { %4642 = vmatprep.subr.mxu1 %v5299_v2  ;;  %1912 = vperm.xlu0 %5239, %v1908_v42   ;;  %v1078_v42 = vld [vmem:[%s5356_s14 + $0x38] sm:$0xff] }
  0x67   :  { %4643 = vmatpush3.msra.mxu1 %v566_v43  ;;  %v1077_v43 = vld [vmem:[%s5356_s14 + $0x30] sm:$0xff] }
  0x68   :  { %4644 = vmatprep.subr.mxu1 %v5299_v2  ;;  %3041 = vperm.xlu1 %5240, %v3037_v33   ;;  %v1187_v33 = vld [vmem:[%s6111_s0 + $0xd8] sm:$0xff] }
  0x69   :  { %4645 = vmatpush3.msra.mxu1 %v565_v44  ;;  %v1076_v44 = vld [vmem:[%s5356_s14 + $0x28] sm:$0xff] }
  0x6a   :  { %4646 = vmatprep.subr.mxu1 %v5299_v2  ;;  %3046 = vperm.xlu0 %5239, %v3038_v45   ;;  %v1075_v45 = vld [vmem:[%s5356_s14 + $0x20] sm:$0xff] }
  0x6b   :  { %4647 = vmatpush3.msra.mxu1 %v564_v46  ;;  %v1074_v46 = vld [vmem:[%s5356_s14 + $0x18] sm:$0xff] }
  0x6c   :  { %4648 = vmatprep.subr.mxu1 %v5299_v2  ;;  %3552 = vperm.xlu1 %5240, %v3549_v34   ;;  %v1188_v34 = vld [vmem:[%s6111_s0 + $0xe0] sm:$0xff] }
  0x6d   :  { %4649 = vmatpush3.msra.mxu1 %v563_v47  ;;  %v1073_v47 = vld [vmem:[%s5356_s14 + $0x10] sm:$0xff] }
  0x6e   :  { %4650 = vmatprep.subr.mxu1 %v5299_v2 }
  0x6f   :  { %4651 = vmatpush3.msra.mxu1 %v562_v48  ;;  %v1072_v48 = vld [vmem:[%s5356_s14 + $0x8] sm:$0xff] }
  0x70   :  { %4652 = vmatprep.subr.mxu1 %v5299_v2 }
  0x71   :  { %4653 = vmatpush3.msra.mxu1 %v561_v49  ;;  %v1071_v49 = vld [vmem:[%s5356_s14] sm:$0xff]  ;;  %s6115_s14 = sld [smem:[#allocation14_spill]] }
  0x72   :  { %4654 = vmatprep.subr.mxu1 %v5299_v2 }
  0x73   :  { %4655 = vmatpush3.msra.mxu1 %v560_v56 }
  0x74   :  { %4656 = vmatprep.subr.mxu1 %v5299_v2 }
  0x75   :  { %4657 = vmatpush3.msra.mxu1 %v559_v58 }
  0x76   :  { %4658 = vmatprep.subr.mxu1 %v5299_v2 }
  0x77   :  { %4659 = vmatpush3.msra.mxu1 %v558_v60 }
  0x78   :  { %4660 = vmatprep.subr.mxu1 %v5299_v2 }
  0x79   :  { %4661 = vmatpush3.msra.mxu1 %v557_v61 }
  0x7a   :  { %4662 = vmatprep.subr.mxu1 %v5299_v2 }
  0x7b   :  { %4663 = vmatpush3.msra.mxu1 %v556_v62 }
  0x7c   :  { %4664 = vmatprep.subr.mxu1 %v5299_v2 }
  0x7d   :  { %4665 = vmatpush3.msra.mxu1 %v555_v63 }
  0xd9   :  { %v551_v14 = vpop.permute.xlu0 %550 }
  0xdd   :  { %v1060_v61 = vpop.permute.xlu0 %1059 }
 0x118   :  { %v221_v51 = vpop.f32.mrf.mxu0 }
 0x119   :  { %4620 = vmatpush3.msk.msra.mxu0 %vm318_vm1, %v221_v51 }
 0x11a   :  { %v4583_v52 = vpop.f32.mrf.mxu0  ;;  %v307_v53 = vpop.f32.mrf.mxu1  ;;  %4622 = vmatmul.mubr.msk.f32.vlgmr.msra.gmra.mxu0 %vm314_vm2, %v4015_v50  ;;  %4629 = vmatprep.subr.mxu0 %v5299_v2 }
 0x11b   :  { %4630 = vmatpush3.msk.msra.mxu0 %vm318_vm1, %v307_v53  ;;  %4631 = vmatprep.mubr.msk.f32.mxu0 %vm5300_vm0, %v5299_v2 }
 0x11c   :  { %v4618_v55 = vpop.f32.mrf.mxu1  ;;  %4669 = vmatprep.subr.mxu0 %v5299_v2 }
 0x11e   :  { %4632 = vmatmul.mubr.msk.f32.vlgmr.msra.gmra.mxu0 %vm314_vm2, %v4020_v54  ;;  %v464_v57 = vpop.f32.mrf.mxu1 }
 0x11f   :  { %4685 = vmatprep.mubr.msk.f32.mxu0 %vm5300_vm0, %v5299_v2  ;;  %4670 = vmatpush3.msra.mxu0 %v648_v0 }
 0x120   :  { %v4628_v59 = vpop.f32.mrf.mxu1  ;;  %4671 = vmatprep.subr.mxu0 %v5299_v2 }
 0x121   :  { %4672 = vmatpush3.msra.mxu0 %v647_v1  ;;  %v1065_v59 = vpop.permute.xlu1 %1064 }
 0x122   :  { %4673 = vmatprep.subr.mxu0 %v5299_v2 }
 0x123   :  { %4674 = vmatpush3.msra.mxu0 %v646_v3  ;;  %v1160_v3 = vld [vmem:[%s6111_s0] sm:$0xff] }
 0x124   :  { %4675 = vmatprep.subr.mxu0 %v5299_v2 }
 0x125   :  { %4676 = vmatpush3.msra.mxu0 %v645_v4  ;;  %v1581_v4 = vld [vmem:[%s6112_s5 + $0x18] sm:$0xff] }
 0x126   :  { %4677 = vmatprep.subr.mxu0 %v5299_v2 }
 0x127   :  { %4678 = vmatpush3.msra.mxu0 %v644_v5 }
 0x128   :  { %4679 = vmatprep.subr.mxu0 %v5299_v2 }
 0x129   :  { %4680 = vmatpush3.msra.mxu0 %v643_v6 }
 0x12a   :  { %4681 = vmatprep.subr.mxu0 %v5299_v2 }
 0x12b   :  { %4682 = vmatpush3.msra.mxu0 %v642_v7  ;;  %v1161_v7 = vld [vmem:[%s6111_s0 + $0x8] sm:$0xff] }
 0x12c   :  { %4683 = vmatprep.subr.mxu0 %v5299_v2 }
 0x12d   :  { %4684 = vmatpush3.msra.mxu0 %v641_v8  ;;  %v1162_v8 = vld [vmem:[%s6111_s0 + $0x10] sm:$0xff] }
 0x12e   :  { %4688 = vmatprep.subr.mxu0 %v5299_v2 }
 0x1da   :  { %v388_v9 = vpop.f32.mrf.mxu0 }
 0x1db   :  { %v465_v11 = vadd.f32 %v464_v57, %v388_v9  ;;  %v1163_v9 = vld [vmem:[%s6111_s0 + $0x18] sm:$0xff] }
 0x1dc   :  { %v4623_v10 = vpop.f32.mrf.mxu0 }
 0x1dd   :  { %v1164_v10 = vld [vmem:[%s6111_s0 + $0x20] sm:$0xff] }
 0x1de   :  { %v542_v12 = vpop.f32.mrf.mxu0 }
 0x1df   :  { %v546_v13 = vadd.f32 %v542_v12, %v465_v11  ;;  %v1165_v11 = vld [vmem:[%s6111_s0 + $0x28] sm:$0xff]  ;;  %v1166_v12 = vld [vmem:[%s6111_s0 + $0x30] sm:$0xff] }
 0x1e0   :  { %v4633_v15 = vpop.f32.mrf.mxu0 }
 0x1e1   :  { %v553_v16 = vadd.f32 %v551_v14, %v546_v13  ;;  %v1167_v13 = vld [vmem:[%s6111_s0 + $0x38] sm:$0xff]  ;;  %v1168_v14 = vld [vmem:[%s6111_s0 + $0x40] sm:$0xff]  ;;  %v1169_v15 = vld [vmem:[%s6111_s0 + $0x48] sm:$0xff] }
 0x1e3   :  { %v554_v17 = vmax.f32 %v553_v16, 0.0  ;;  %v1170_v16 = vld [vmem:[%s6111_s0 + $0x50] sm:$0xff] }
 0x1e5   :  { %4667 = vmatmul.mubr.f32.vlgmr.msra.gmra.mxu1 %v554_v17  ;;  %v1171_v17 = vld [vmem:[%s6111_s0 + $0x58] sm:$0xff] }
 0x1e6   :  { %4709 = vmatprep.mubr.msk.f32.mxu1 %vm806_vm4, %v4025_v28  ;;  %v1182_v28 = vld [vmem:[%s6111_s0 + $0xb0] sm:$0xff] }
 0x2a5   :  { %v637_v19 = vpop.f32.mrf.mxu1 }
 0x2a6   :  { %4686 = vmatmul.mubr.msk.f32.vlgmr.msra.gmra.mxu0 %vm649_vm3, %v637_v19 }
 0x2a7   :  { %4689 = vmatpush3.msra.mxu0 %v730_v18  ;;  %v4668_v21 = vpop.f32.mrf.mxu1  ;;  %4704 = vmatprep.mubr.msk.f32.mxu0 %vm5300_vm0, %v5299_v2  ;;  %v1172_v18 = vld [vmem:[%s6111_s0 + $0x60] sm:$0xff] }
 0x2a8   :  { %4690 = vmatprep.subr.mxu0 %v5299_v2  ;;  %v1175_v21 = vld [vmem:[%s6111_s0 + $0x78] sm:$0xff] }
 0x2a9   :  { %4691 = vmatpush3.msra.mxu0 %v729_v20  ;;  %v1174_v20 = vld [vmem:[%s6111_s0 + $0x70] sm:$0xff] }
 0x2aa   :  { %4692 = vmatprep.subr.mxu0 %v5299_v2 }
 0x2ab   :  { %4693 = vmatpush3.msra.mxu0 %v728_v22  ;;  %v1176_v22 = vld [vmem:[%s6111_s0 + $0x80] sm:$0xff] }
 0x2ac   :  { %4694 = vmatprep.subr.mxu0 %v5299_v2 }
 0x2ad   :  { %4695 = vmatpush3.msra.mxu0 %v727_v23  ;;  %v1177_v23 = vld [vmem:[%s6111_s0 + $0x88] sm:$0xff] }
 0x2ae   :  { %4696 = vmatprep.subr.mxu0 %v5299_v2 }
 0x2af   :  { %4697 = vmatpush3.msra.mxu0 %v726_v24  ;;  %v1178_v24 = vld [vmem:[%s6111_s0 + $0x90] sm:$0xff] }
 0x2b0   :  { %4698 = vmatprep.subr.mxu0 %v5299_v2 }
 0x2b1   :  { %4699 = vmatpush3.msra.mxu0 %v725_v25  ;;  %v1179_v25 = vld [vmem:[%s6111_s0 + $0x98] sm:$0xff] }
 0x2b2   :  { %4700 = vmatprep.subr.mxu0 %v5299_v2 }
 0x2b3   :  { %4701 = vmatpush3.msra.mxu0 %v724_v26  ;;  %v1180_v26 = vld [vmem:[%s6111_s0 + $0xa0] sm:$0xff] }
 0x2b4   :  { %4702 = vmatprep.subr.mxu0 %v5299_v2 }
 0x2b5   :  { %4703 = vmatpush3.msra.mxu0 %v723_v27  ;;  %v1181_v27 = vld [vmem:[%s6111_s0 + $0xa8] sm:$0xff] }
 0x2b6   :  { %4705 = vmatmul.mubr.msk.f32.vlgmr.msra.gmra.mxu0 %vm649_vm3, %v637_v19  ;;  %4712 = vmatprep.subr.mxu0 %v637_v19 }
 0x2b7   :  { %4713 = vmatpush3.msra.mxu0 %v637_v19  ;;  %4714 = vmatprep.mubr.msk.f32.mxu0 %vm806_vm4, %v801_v29  ;;  %v1173_v19 = vld [vmem:[%s6111_s0 + $0x68] sm:$0xff]  ;;  %v1183_v29 = vld [vmem:[%s6111_s0 + $0xb8] sm:$0xff] }
 0x2b8   :  { %4722 = vmatprep.subr.mxu0 %v1078_v42 }
 0x2ba   :  { %4715 = vmatmul.mubr.msk.f32.vlgmr.msra.gmra.mxu0 %vm806_vm4, %v802_v30  ;;  %v1184_v30 = vld [vmem:[%s6111_s0 + $0xc0] sm:$0xff] }
 0x2bb   :  { %4723 = vmatpush3.msra.mxu0 %v1078_v42  ;;  %v1514_v42 = vld [vmem:[%s6113_s29] sm:$0xff] }
 0x2bc   :  { %4724 = vmatprep.subr.mxu0 %v1077_v43 }
 0x2bd   :  { %4725 = vmatpush3.msra.mxu0 %v1077_v43  ;;  %v1515_v43 = vld [vmem:[%s6113_s29 + $0x8] sm:$0xff] }
 0x2be   :  { %4726 = vmatprep.subr.mxu0 %v1076_v44 }
 0x2bf   :  { %4727 = vmatpush3.msra.mxu0 %v1076_v44 }
 0x2c0   :  { %4728 = vmatprep.subr.mxu0 %v1075_v45 }
 0x2c1   :  { %4729 = vmatpush3.msra.mxu0 %v1075_v45 }
 0x2c2   :  { %4730 = vmatprep.subr.mxu0 %v1074_v46 }
 0x2c3   :  { %4731 = vmatpush3.msra.mxu0 %v1074_v46 }
 0x2c4   :  { %4732 = vmatprep.subr.mxu0 %v1073_v47 }
 0x2c5   :  { %4733 = vmatpush3.msra.mxu0 %v1073_v47 }
 0x2c6   :  { %4734 = vmatprep.subr.mxu0 %v1072_v48 }
 0x2c7   :  { %4735 = vmatpush3.msra.mxu0 %v1072_v48  ;;  %v1516_v48 = vld [vmem:[%s6113_s29 + $0x10] sm:$0xff] }
 0x2c8   :  { %4736 = vmatprep.subr.mxu0 %v1071_v49 }
 0x2c9   :  { %4737 = vmatpush3.msra.mxu0 %v1071_v49  ;;  %v1517_v49 = vld [vmem:[%s6113_s29 + $0x18] sm:$0xff] }
 0x2ca   :  { %4793 = vmatprep.subr.mxu0 %v1581_v4 }
 0x366   :  { %v719_v35 = vpop.f32.mrf.mxu0 }
 0x367   :  { %4707 = vmatprep.subr.mxu1 %v719_v35 }
 0x368   :  { %v4687_v38 = vpop.f32.mrf.mxu0  ;;  %4708 = vmatpush3.msra.mxu1 %v719_v35  ;;  %v1189_v35 = vld [vmem:[%s6111_s0 + $0xe8] sm:$0xff] }
 0x369   :  { %4710 = vmatmul.mubr.msk.f32.vlgmr.msra.gmra.mxu1 %vm806_vm4, %v4026_v36  ;;  %v1190_v36 = vld [vmem:[%s6111_s0 + $0xf0] sm:$0xff] }
 0x36a   :  { %4719 = vmatprep.mubr.msk.f32.mxu1 %vm806_vm4, %v4031_v37  ;;  %v1191_v37 = vld [vmem:[%s6111_s0 + $0xf8] sm:$0xff]  ;;  %v1580_v38 = vld [vmem:[%s6112_s5 + $0x10] sm:$0xff] }
 0x376   :  { %v797_v39 = vpop.f32.mrf.mxu0 }
 0x377   :  { %4717 = vmatprep.subr.mxu1 %v797_v39 }
 0x378   :  { %v4706_v41 = vpop.f32.mrf.mxu0  ;;  %4718 = vmatpush3.msra.mxu1 %v797_v39  ;;  %v1579_v39 = vld [vmem:[%s6112_s5 + $0x8] sm:$0xff] }
 0x379   :  { %4720 = vmatmul.mubr.msk.f32.vlgmr.msra.gmra.mxu1 %vm806_vm4, %v4032_v40  ;;  %v1578_v40 = vld [vmem:[%s6112_s5] sm:$0xff] }
 0x37a   :  { %v4716_v51 = vpop.f32.mrf.mxu0  ;;  %4745 = vmatprep.mubr.msk.f32.mxu1 %vm1192_vm5, %v1160_v3  ;;  %v1522_v3 = vld [vmem:[%s6113_s29 + $0x40] sm:$0xff] }
 0x37c   :  { %v960_v53 = vpop.f32.mrf.mxu0 }
 0x429   :  { %v4711_v50 = vpop.f32.mrf.mxu1 }
 0x42a   :  { %v966_v54 = vadd.f32 %v4716_v51, %v4711_v50 }
 0x42b   :  { %v879_v52 = vpop.f32.mrf.mxu1 }
 0x42c   :  { %v961_v56 = vadd.f32 %v960_v53, %v879_v52 }
 0x439   :  { %v4721_v55 = vpop.f32.mrf.mxu1 }
 0x43a   :  { %v1054_v57 = vadd.f32 %v4721_v55, %v966_v54  ;;  %v1518_v54 = vld [vmem:[%s6113_s29 + $0x20] sm:$0xff]  ;;  %v1519_v55 = vld [vmem:[%s6113_s29 + $0x28] sm:$0xff] }
 0x43b   :  { %v1044_v58 = vpop.f32.mrf.mxu1 }
 0x43c   :  { %v1053_v60 = vadd.f32 %v1044_v58, %v961_v56  ;;  %v1068_v62 = vadd.f32 %v1065_v59, %v1054_v57 }
 0x43e   :  { %v1067_v63 = vadd.f32 %v1060_v61, %v1053_v60  ;;  %v1070_v1 = vmax.f32 %v1068_v62, 0.0  ;;  %v1520_v60 = vld [vmem:[%s6113_s29 + $0x30] sm:$0xff]  ;;  %v1521_v61 = vld [vmem:[%s6113_s29 + $0x38] sm:$0xff] }
 0x440   :  { %v1069_v0 = vmax.f32 %v1067_v63, 0.0 }
 0x442   :  { %4738 = vmatprep.mubr.msk.f32.mxu0 %vm649_vm3, %v1069_v0 }
 0x443   :  { %4739 = vmatmul.mubr.msk.f32.vlgmr.msra.gmra.mxu0 %vm649_vm3, %v1070_v1 }
 0x444   :  { %4794 = vmatpush3.msra.mxu0 %v1581_v4  ;;  %v1523_v4 = vld [vmem:[%s6113_s29 + $0x48] sm:$0xff] }
 0x445   :  { %4795 = vmatprep.subr.mxu0 %v1580_v38 }
 0x446   :  { %4796 = vmatpush3.msra.mxu0 %v1580_v38 }
 0x447   :  { %4797 = vmatprep.subr.mxu0 %v1579_v39 }
 0x448   :  { %4798 = vmatpush3.msra.mxu0 %v1579_v39  ;;  %v1534_v39 = vld [vmem:[%s6113_s29 + $0xa0] sm:$0xff] }
 0x449   :  { %4799 = vmatprep.subr.mxu0 %v1578_v40 }
 0x44a   :  { %4800 = vmatpush3.msra.mxu0 %v1578_v40  ;;  %v1535_v40 = vld [vmem:[%s6113_s29 + $0xa8] sm:$0xff] }
 0x503   :  { %v4740_v5 = vpop.f32.mrf.mxu0 }
 0x504   :  { %4741 = vmatprep.subr.mxu1 %v4740_v5 }
 0x505   :  { %v1151_v6 = vpop.f32.mrf.mxu0  ;;  %4742 = vmatpush3.msra.mxu1 %v4740_v5 }
 0x506   :  { %4743 = vmatprep.subr.mxu1 %v1151_v6 }
 0x507   :  { %4744 = vmatpush3.msra.mxu1 %v1151_v6 }
 0x508   :  { %4746 = vmatmul.mubr.msk.f32.vlgmr.msra.gmra.mxu1 %vm1192_vm5, %v1161_v7 }
 0x509   :  { %4748 = vmatprep.mubr.msk.f32.mxu1 %vm1192_vm5, %v1162_v8 }
 0x50c   :  { %4749 = vmatmul.mubr.msk.f32.gmra.mxu1 %vm1192_vm5, %v1163_v9  ;;  %v1524_v9 = vld [vmem:[%s6113_s29 + $0x50] sm:$0xff] }
 0x50d   :  { %4751 = vmatprep.mubr.msk.f32.mxu1 %vm1192_vm5, %v1164_v10  ;;  %v1525_v10 = vld [vmem:[%s6113_s29 + $0x58] sm:$0xff] }
 0x510   :  { %4752 = vmatmul.mubr.msk.f32.gmra.mxu1 %vm1192_vm5, %v1165_v11 }
 0x511   :  { %4754 = vmatprep.mubr.msk.f32.mxu1 %vm1192_vm5, %v1166_v12 }
 0x514   :  { %4755 = vmatmul.mubr.msk.f32.gmra.mxu1 %vm1192_vm5, %v1167_v13 }
 0x515   :  { %4757 = vmatprep.mubr.msk.f32.mxu1 %vm1192_vm5, %v1168_v14 }
 0x518   :  { %4758 = vmatmul.mubr.msk.f32.gmra.mxu1 %vm1192_vm5, %v1169_v15  ;;  %v1526_v15 = vld [vmem:[%s6113_s29 + $0x60] sm:$0xff] }
 0x519   :  { %4760 = vmatprep.mubr.msk.f32.mxu1 %vm1192_vm5, %v1170_v16  ;;  %v1527_v16 = vld [vmem:[%s6113_s29 + $0x68] sm:$0xff] }
 0x51c   :  { %4761 = vmatmul.mubr.msk.f32.gmra.mxu1 %vm1192_vm5, %v1171_v17 }
 0x51d   :  { %4763 = vmatprep.mubr.msk.f32.mxu1 %vm1192_vm5, %v1172_v18 }
 0x520   :  { %4764 = vmatmul.mubr.msk.f32.gmra.mxu1 %vm1192_vm5, %v1173_v19 }
 0x521   :  { %4766 = vmatprep.mubr.msk.f32.mxu1 %vm1192_vm5, %v1174_v20 }
 0x524   :  { %4767 = vmatmul.mubr.msk.f32.gmra.mxu1 %vm1192_vm5, %v1175_v21  ;;  %v1528_v21 = vld [vmem:[%s6113_s29 + $0x70] sm:$0xff] }
 0x525   :  { %4769 = vmatprep.mubr.msk.f32.mxu1 %vm1192_vm5, %v1176_v22  ;;  %v1529_v22 = vld [vmem:[%s6113_s29 + $0x78] sm:$0xff] }
 0x528   :  { %4770 = vmatmul.mubr.msk.f32.gmra.mxu1 %vm1192_vm5, %v1177_v23 }
 0x529   :  { %4772 = vmatprep.mubr.msk.f32.mxu1 %vm1192_vm5, %v1178_v24 }
 0x52c   :  { %4773 = vmatmul.mubr.msk.f32.gmra.mxu1 %vm1192_vm5, %v1179_v25 }
 0x52d   :  { %4775 = vmatprep.mubr.msk.f32.mxu1 %vm1192_vm5, %v1180_v26 }
 0x530   :  { %4776 = vmatmul.mubr.msk.f32.gmra.mxu1 %vm1192_vm5, %v1181_v27  ;;  %v1530_v27 = vld [vmem:[%s6113_s29 + $0x80] sm:$0xff] }
 0x531   :  { %4778 = vmatprep.mubr.msk.f32.mxu1 %vm1192_vm5, %v1182_v28  ;;  %v1531_v28 = vld [vmem:[%s6113_s29 + $0x88] sm:$0xff] }
 0x534   :  { %4779 = vmatmul.mubr.msk.f32.gmra.mxu1 %vm1192_vm5, %v1183_v29 }
 0x535   :  { %4781 = vmatprep.mubr.msk.f32.mxu1 %vm1192_vm5, %v1184_v30 }
 0x538   :  { %4782 = vmatmul.mubr.msk.f32.gmra.mxu1 %vm1192_vm5, %v1185_v31 }
 0x539   :  { %4784 = vmatprep.mubr.msk.f32.mxu1 %vm1192_vm5, %v1186_v32 }
 0x53c   :  { %4785 = vmatmul.mubr.msk.f32.gmra.mxu1 %vm1192_vm5, %v1187_v33  ;;  %v1532_v33 = vld [vmem:[%s6113_s29 + $0x90] sm:$0xff] }
 0x53d   :  { %4787 = vmatprep.mubr.msk.f32.mxu1 %vm1192_vm5, %v1188_v34  ;;  %v1533_v34 = vld [vmem:[%s6113_s29 + $0x98] sm:$0xff] }
 0x540   :  { %4788 = vmatmul.mubr.msk.f32.gmra.mxu1 %vm1192_vm5, %v1189_v35 }
 0x541   :  { %4790 = vmatprep.mubr.msk.f32.mxu1 %vm1192_vm5, %v1190_v36 }
 0x544   :  { %4791 = vmatmul.mubr.msk.f32.gmra.mxu1 %vm1192_vm5, %v1191_v37 }
 0x5c8   :  { %v4747_v41 = vpop.f32.mrf.mxu1 }
 0x5c9   :  { %v1547_v46 = vmul.f32 %v4747_v41, %v1515_v43 }
 0x5ca   :  { %v1355_v44 = vpop.f32.mrf.mxu1 }
 0x5cb   :  { %v1546_v45 = vmul.f32 %v1514_v42, %v1355_v44 }
 0x5cc   :  { %v4750_v47 = vpop.f32.mrf.mxu1 }
 0x5cd   :  { %4801 = vmatprep.mubr.msk.f32.mxu0 %vm1582_vm6, %v1546_v45  ;;  %v1549_v52 = vmul.f32 %v4750_v47, %v1517_v49  ;;  %v1536_v45 = vld [vmem:[%s6113_s29 + $0xb0] sm:$0xff] }
 0x5ce   :  { %v1365_v50 = vpop.f32.mrf.mxu1  ;;  %4802 = vmatmul.mubr.msk.f32.vlgmr.msra.gmra.mxu0 %vm1582_vm6, %v1547_v46  ;;  %v1537_v46 = vld [vmem:[%s6113_s29 + $0xb8] sm:$0xff] }
 0x5cf   :  { %v1548_v51 = vmul.f32 %v1516_v48, %v1365_v50 }
 0x5d0   :  { %v4753_v53 = vpop.f32.mrf.mxu1 }
 0x5d1   :  { %4804 = vmatprep.mubr.msk.f32.mxu0 %vm1582_vm6, %v1548_v51  ;;  %v1551_v58 = vmul.f32 %v4753_v53, %v1519_v55  ;;  %v1538_v51 = vld [vmem:[%s6113_s29 + $0xc0] sm:$0xff] }
 0x5d2   :  { %v1375_v56 = vpop.f32.mrf.mxu1  ;;  %4805 = vmatmul.mubr.msk.f32.gmra.mxu0 %vm1582_vm6, %v1549_v52  ;;  %v1539_v52 = vld [vmem:[%s6113_s29 + $0xc8] sm:$0xff] }
 0x5d3   :  { %v1550_v57 = vmul.f32 %v1518_v54, %v1375_v56 }
 0x5d4   :  { %v4756_v59 = vpop.f32.mrf.mxu1 }
 0x5d5   :  { %4807 = vmatprep.mubr.msk.f32.mxu0 %vm1582_vm6, %v1550_v57  ;;  %v1553_v0 = vmul.f32 %v4756_v59, %v1521_v61  ;;  %v1540_v57 = vld [vmem:[%s6113_s29 + $0xd0] sm:$0xff] }
 0x5d6   :  { %v1385_v62 = vpop.f32.mrf.mxu1  ;;  %4808 = vmatmul.mubr.msk.f32.gmra.mxu0 %vm1582_vm6, %v1551_v58  ;;  %v1541_v58 = vld [vmem:[%s6113_s29 + $0xd8] sm:$0xff] }
 0x5d7   :  { %v1552_v63 = vmul.f32 %v1520_v60, %v1385_v62 }
 0x5d8   :  { %v4759_v1 = vpop.f32.mrf.mxu1 }
 0x5d9   :  { %4810 = vmatprep.mubr.msk.f32.mxu0 %vm1582_vm6, %v1552_v63  ;;  %v1555_v7 = vmul.f32 %v4759_v1, %v1523_v4  ;;  %v1542_v63 = vld [vmem:[%s6113_s29 + $0xe0] sm:$0xff] }
 0x5da   :  { %v1395_v5 = vpop.f32.mrf.mxu1  ;;  %4811 = vmatmul.mubr.msk.f32.gmra.mxu0 %vm1582_vm6, %v1553_v0  ;;  %v1543_v0 = vld [vmem:[%s6113_s29 + $0xe8] sm:$0xff] }
 0x5db   :  { %v1554_v6 = vmul.f32 %v1522_v3, %v1395_v5 }
 0x5dc   :  { %v4762_v8 = vpop.f32.mrf.mxu1 }
 0x5dd   :  { %4813 = vmatprep.mubr.msk.f32.mxu0 %vm1582_vm6, %v1554_v6  ;;  %v1557_v13 = vmul.f32 %v4762_v8, %v1525_v10  ;;  %v1544_v6 = vld [vmem:[%s6113_s29 + $0xf0] sm:$0xff] }
 0x5de   :  { %v1405_v11 = vpop.f32.mrf.mxu1  ;;  %4814 = vmatmul.mubr.msk.f32.gmra.mxu0 %vm1582_vm6, %v1555_v7  ;;  %v1545_v7 = vld [vmem:[%s6113_s29 + $0xf8] sm:$0xff] }
 0x5df   :  { %v1556_v12 = vmul.f32 %v1524_v9, %v1405_v11  ;;  %v1905_v11 = vld [vmem:[%s6114_s8 + $0x8] sm:$0xff] }
 0x5e0   :  { %v4765_v14 = vpop.f32.mrf.mxu1  ;;  %1984 = vmatprep.mubr.f32.mxu1 %v1905_v11  ;;  %v2015_v11 = vld [vmem:[%s6115_s14 + $0x40] sm:$0xff] }
 0x5e1   :  { %4816 = vmatprep.mubr.msk.f32.mxu0 %vm1582_vm6, %v1556_v12  ;;  %v1559_v19 = vmul.f32 %v4765_v14, %v1527_v16 }
 0x5e2   :  { %v1415_v17 = vpop.f32.mrf.mxu1  ;;  %4817 = vmatmul.mubr.msk.f32.gmra.mxu0 %vm1582_vm6, %v1557_v13 }
 0x5e3   :  { %v1558_v18 = vmul.f32 %v1526_v15, %v1415_v17 }
 0x5e4   :  { %v4768_v20 = vpop.f32.mrf.mxu1 }
 0x5e5   :  { %4819 = vmatprep.mubr.msk.f32.mxu0 %vm1582_vm6, %v1558_v18  ;;  %v1561_v25 = vmul.f32 %v4768_v20, %v1529_v22 }
 0x5e6   :  { %v1425_v23 = vpop.f32.mrf.mxu1  ;;  %4820 = vmatmul.mubr.msk.f32.gmra.mxu0 %vm1582_vm6, %v1559_v19 }
 0x5e7   :  { %v1560_v24 = vmul.f32 %v1528_v21, %v1425_v23 }
 0x5e8   :  { %v4771_v26 = vpop.f32.mrf.mxu1 }
 0x5e9   :  { %4822 = vmatprep.mubr.msk.f32.mxu0 %vm1582_vm6, %v1560_v24  ;;  %v1563_v31 = vmul.f32 %v4771_v26, %v1531_v28 }
 0x5ea   :  { %v1435_v29 = vpop.f32.mrf.mxu1  ;;  %4823 = vmatmul.mubr.msk.f32.gmra.mxu0 %vm1582_vm6, %v1561_v25 }
 0x5eb   :  { %v1562_v30 = vmul.f32 %v1530_v27, %v1435_v29 }
 0x5ec   :  { %v4774_v32 = vpop.f32.mrf.mxu1 }
 0x5ed   :  { %4825 = vmatprep.mubr.msk.f32.mxu0 %vm1582_vm6, %v1562_v30  ;;  %v1565_v37 = vmul.f32 %v4774_v32, %v1533_v34 }
 0x5ee   :  { %v1445_v35 = vpop.f32.mrf.mxu1  ;;  %4826 = vmatmul.mubr.msk.f32.gmra.mxu0 %vm1582_vm6, %v1563_v31 }
 0x5ef   :  { %v1564_v36 = vmul.f32 %v1532_v33, %v1445_v35 }
 0x5f0   :  { %v4777_v38 = vpop.f32.mrf.mxu1 }
 0x5f1   :  { %4828 = vmatprep.mubr.msk.f32.mxu0 %vm1582_vm6, %v1564_v36  ;;  %v1567_v43 = vmul.f32 %v4777_v38, %v1535_v40 }
 0x5f2   :  { %v1455_v41 = vpop.f32.mrf.mxu1  ;;  %4829 = vmatmul.mubr.msk.f32.gmra.mxu0 %vm1582_vm6, %v1565_v37 }
 0x5f3   :  { %v1566_v42 = vmul.f32 %v1534_v39, %v1455_v41 }
 0x5f4   :  { %v4780_v44 = vpop.f32.mrf.mxu1 }
 0x5f5   :  { %4831 = vmatprep.mubr.msk.f32.mxu0 %vm1582_vm6, %v1566_v42  ;;  %v1569_v49 = vmul.f32 %v4780_v44, %v1537_v46  ;;  %v1904_v44 = vld [vmem:[%s6114_s8] sm:$0xff]  ;;  %v1906_v46 = vld [vmem:[%s6114_s8 + $0x10] sm:$0xff] }
 0x5f6   :  { %v1465_v47 = vpop.f32.mrf.mxu1  ;;  %4832 = vmatmul.mubr.msk.f32.gmra.mxu0 %vm1582_vm6, %v1567_v43 }
 0x5f7   :  { %v1568_v48 = vmul.f32 %v1536_v45, %v1465_v47  ;;  %v1907_v45 = vld [vmem:[%s6114_s8 + $0x18] sm:$0xff]  ;;  %v2007_v47 = vld [vmem:[%s6115_s14] sm:$0xff] }
 0x5f8   :  { %v4783_v50 = vpop.f32.mrf.mxu1 }
 0x5f9   :  { %4834 = vmatprep.mubr.msk.f32.mxu0 %vm1582_vm6, %v1568_v48  ;;  %v1571_v55 = vmul.f32 %v4783_v50, %v1539_v52  ;;  %v2216_v48 = vld [vmem:[%s6116_s19] sm:$0x3]  ;;  %v1913_v52 = vpop.permute.xlu0 %1912 }
 0x5fa   :  { %v1475_v53 = vpop.f32.mrf.mxu1  ;;  %4835 = vmatmul.mubr.msk.f32.gmra.mxu0 %vm1582_vm6, %v1569_v49  ;;  %4875 = vmatprep.subr.msk.mxu0 %vm2265_vm7, %v2216_v48 }
 0x5fb   :  { %v1570_v54 = vmul.f32 %v1538_v51, %v1475_v53  ;;  %4876 = vmatpush3.msk.msra.mxu0 %vm2265_vm7, %v2216_v48 }
 0x5fc   :  { %v4786_v56 = vpop.f32.mrf.mxu1 }
 0x5fd   :  { %4837 = vmatprep.mubr.msk.f32.mxu0 %vm1582_vm6, %v1570_v54  ;;  %v1573_v61 = vmul.f32 %v4786_v56, %v1541_v58  ;;  %v1918_v58 = vpop.permute.xlu1 %1917 }
 0x5fe   :  { %v1485_v59 = vpop.f32.mrf.mxu1  ;;  %4838 = vmatmul.mubr.msk.f32.gmra.mxu0 %vm1582_vm6, %v1571_v55 }
 0x5ff   :  { %v1572_v60 = vmul.f32 %v1540_v57, %v1485_v59 }
 0x600   :  { %v4789_v62 = vpop.f32.mrf.mxu1 }
 0x601   :  { %4840 = vmatprep.mubr.msk.f32.mxu0 %vm1582_vm6, %v1572_v60  ;;  %v1575_v4 = vmul.f32 %v4789_v62, %v1543_v0 }
 0x602   :  { %v1495_v1 = vpop.f32.mrf.mxu1  ;;  %4841 = vmatmul.mubr.msk.f32.gmra.mxu0 %vm1582_vm6, %v1573_v61 }
 0x603   :  { %v1574_v3 = vmul.f32 %v1542_v63, %v1495_v1  ;;  %v1997_v63 = vld [vmem:[%s6117_s30] sm:$0xff] }
 0x604   :  { %v4792_v5 = vpop.f32.mrf.mxu1 }
 0x605   :  { %4843 = vmatprep.mubr.msk.f32.mxu0 %vm1582_vm6, %v1574_v3  ;;  %v1577_v10 = vmul.f32 %v4792_v5, %v1545_v7  ;;  %v2009_v5 = vld [vmem:[%s6115_s14 + $0x10] sm:$0xff]  ;;  %v2011_v7 = vld [vmem:[%s6115_s14 + $0x20] sm:$0xff] }
 0x606   :  { %v1505_v8 = vpop.f32.mrf.mxu1  ;;  %4844 = vmatmul.mubr.msk.f32.gmra.mxu0 %vm1582_vm6, %v1575_v4  ;;  %v2008_v4 = vld [vmem:[%s6115_s14 + $0x8] sm:$0xff] }
 0x607   :  { %v1576_v9 = vmul.f32 %v1544_v6, %v1505_v8  ;;  %v2010_v6 = vld [vmem:[%s6115_s14 + $0x18] sm:$0xff]  ;;  %v2012_v8 = vld [vmem:[%s6115_s14 + $0x28] sm:$0xff] }
 0x609   :  { %4846 = vmatprep.mubr.msk.f32.mxu0 %vm1582_vm6, %v1576_v9  ;;  %v2013_v9 = vld [vmem:[%s6115_s14 + $0x30] sm:$0xff] }
 0x60a   :  { %4847 = vmatmul.mubr.msk.f32.gmra.mxu0 %vm1582_vm6, %v1577_v10  ;;  %v2014_v10 = vld [vmem:[%s6115_s14 + $0x38] sm:$0xff] }
 0x68e   :  { %v4803_v12 = vpop.f32.mrf.mxu0 }
 0x690   :  { %v5805_v13 = vpop.f32.mrf.mxu0 }
 0x692   :  { %v4806_v14 = vpop.f32.mrf.mxu0 }
 0x694   :  { %v1755_v15 = vpop.f32.mrf.mxu0 }
 0x696   :  { %v4809_v16 = vpop.f32.mrf.mxu0 }
 0x698   :  { %v1765_v17 = vpop.f32.mrf.mxu0 }
 0x69a   :  { %v4812_v18 = vpop.f32.mrf.mxu0 }
 0x69c   :  { %v1775_v19 = vpop.f32.mrf.mxu0 }
 0x69e   :  { %v4815_v20 = vpop.f32.mrf.mxu0 }
 0x6a0   :  { %v1785_v21 = vpop.f32.mrf.mxu0 }
 0x6a2   :  { %v4818_v22 = vpop.f32.mrf.mxu0 }
 0x6a4   :  { %v1795_v23 = vpop.f32.mrf.mxu0 }
 0x6a6   :  { %v4821_v24 = vpop.f32.mrf.mxu0 }
 0x6a8   :  { %v1805_v25 = vpop.f32.mrf.mxu0 }
 0x6aa   :  { %v4824_v26 = vpop.f32.mrf.mxu0 }
 0x6ac   :  { %v1815_v27 = vpop.f32.mrf.mxu0 }
 0x6ae   :  { %v4827_v28 = vpop.f32.mrf.mxu0 }
 0x6b0   :  { %v1825_v29 = vpop.f32.mrf.mxu0 }
 0x6b2   :  { %v4830_v30 = vpop.f32.mrf.mxu0 }
 0x6b4   :  { %v1835_v31 = vpop.f32.mrf.mxu0 }
 0x6b6   :  { %v4833_v32 = vpop.f32.mrf.mxu0 }
 0x6b8   :  { %v1845_v33 = vpop.f32.mrf.mxu0 }
 0x6ba   :  { %v4836_v34 = vpop.f32.mrf.mxu0 }
 0x6bc   :  { %v1855_v35 = vpop.f32.mrf.mxu0 }
 0x6be   :  { %v4839_v36 = vpop.f32.mrf.mxu0 }
 0x6c0   :  { %v1865_v37 = vpop.f32.mrf.mxu0 }
 0x6c2   :  { %v4842_v38 = vpop.f32.mrf.mxu0 }
 0x6c4   :  { %v1875_v39 = vpop.f32.mrf.mxu0 }
 0x6c6   :  { %v4845_v40 = vpop.f32.mrf.mxu0 }
 0x6c8   :  { %v1885_v41 = vpop.f32.mrf.mxu0 }
 0x6ca   :  { %v4848_v42 = vpop.f32.mrf.mxu0 }
 0x6cb   :  { %4326 = vmatprep.subr.mxu1 %v4848_v42 }
 0x6cc   :  { %v1895_v43 = vpop.f32.mrf.mxu0  ;;  %4327 = vmatpush3.msra.mxu1 %v4824_v26 }
 0x6cd   :  { %4328 = vmatprep.subr.mxu1 %v1895_v43 }
 0x6ce   :  { %4329 = vmatpush3.msra.mxu1 %v1815_v27 }
 0x6cf   :  { %4330 = vmatprep.subr.mxu1 %v4845_v40 }
 0x6d0   :  { %4331 = vmatpush3.msra.mxu1 %v4821_v24 }
 0x6d1   :  { %4332 = vmatprep.subr.mxu1 %v1885_v41 }
 0x6d2   :  { %4333 = vmatpush3.msra.mxu1 %v1805_v25 }
 0x6d3   :  { %4334 = vmatprep.subr.mxu1 %v4842_v38 }
 0x6d4   :  { %4335 = vmatpush3.msra.mxu1 %v4818_v22 }
 0x6d5   :  { %4336 = vmatprep.subr.mxu1 %v1875_v39 }
 0x6d6   :  { %4337 = vmatpush3.msra.mxu1 %v1795_v23 }
 0x6d7   :  { %4338 = vmatprep.subr.mxu1 %v4839_v36 }
 0x6d8   :  { %4339 = vmatpush3.msra.mxu1 %v4815_v20 }
 0x6d9   :  { %4340 = vmatprep.subr.mxu1 %v1865_v37 }
 0x6da   :  { %4341 = vmatpush3.msra.mxu1 %v1785_v21 }
 0x6db   :  { %4342 = vmatprep.subr.mxu1 %v4836_v34 }
 0x6dc   :  { %4343 = vmatpush3.msra.mxu1 %v4812_v18  ;;  %v2022_v18 = vld [vmem:[%s6115_s14 + $0x78] sm:$0xff] }
 0x6dd   :  { %4344 = vmatprep.subr.mxu1 %v1855_v35 }
 0x6de   :  { %4345 = vmatpush3.msra.mxu1 %v1775_v19 }
 0x6df   :  { %4346 = vmatprep.subr.mxu1 %v4833_v32 }
 0x6e0   :  { %4347 = vmatpush3.msra.mxu1 %v4809_v16  ;;  %v2020_v16 = vld [vmem:[%s6115_s14 + $0x68] sm:$0xff] }
 0x6e1   :  { %4348 = vmatprep.subr.mxu1 %v1845_v33 }
 0x6e2   :  { %4349 = vmatpush3.msra.mxu1 %v1765_v17  ;;  %v2021_v17 = vld [vmem:[%s6115_s14 + $0x70] sm:$0xff] }
 0x6e3   :  { %4350 = vmatprep.subr.mxu1 %v4830_v30 }
 0x6e4   :  { %4351 = vmatpush3.msra.mxu1 %v4806_v14  ;;  %v2018_v14 = vld [vmem:[%s6115_s14 + $0x58] sm:$0xff] }
 0x6e5   :  { %4352 = vmatprep.subr.mxu1 %v1835_v31 }
 0x6e6   :  { %4353 = vmatpush3.msra.mxu1 %v1755_v15  ;;  %v2019_v15 = vld [vmem:[%s6115_s14 + $0x60] sm:$0xff] }
 0x6e7   :  { %4354 = vmatprep.subr.mxu1 %v4827_v28 }
 0x6e8   :  { %4355 = vmatpush3.msra.mxu1 %v4803_v12  ;;  %v2016_v12 = vld [vmem:[%s6115_s14 + $0x48] sm:$0xff] }
 0x6e9   :  { %4356 = vmatprep.subr.mxu1 %v1825_v29 }
 0x6ea   :  { %4357 = vmatpush3.msra.mxu1 %v5805_v13  ;;  %v2017_v13 = vld [vmem:[%s6115_s14 + $0x50] sm:$0xff] }
 0x6eb   :  { %1985 = vmatmul.mubr.f32.vlgmr.msra.gmra.mxu1 %v1904_v44 }
 0x6ec   :  { %1989 = vmatprep.mubr.f32.mxu1 %v1907_v45 }
 0x6ef   :  { %1990 = vmatmul.mubr.f32.gmra.mxu1 %v1906_v46 }
 0x6f0   :  { %4851 = vmatprep.mubr.msk.f32.mxu1 %vm806_vm4, %v2007_v47 }
 0x7ab   :  { %v4358_v49 = vpop.f32.mrf.mxu1 }
 0x7ad   :  { %v4359_v50 = vpop.f32.mrf.mxu1 }
 0x7ae   :  { %v4360_v51 = vadd.f32 %v4359_v50, %v4358_v49 }
 0x7af   :  { %v4361_v53 = vpop.f32.mrf.mxu1 }
 0x7b0   :  { %v1987_v54 = vadd.f32 %v4360_v51, %v1913_v52 }
 0x7b1   :  { %v4362_v55 = vpop.f32.mrf.mxu1 }
 0x7b2   :  { %v1995_v56 = vmax.f32 %v1987_v54, 0.0  ;;  %v4363_v57 = vadd.f32 %v4362_v55, %v4361_v53 }
 0x7b4   :  { %2004 = vst.msk [vmem:[%s5471_s24] sm:$0xff] %vm2003_vm8, %v1995_v56  ;;  %v1992_v59 = vadd.f32 %v4363_v57, %v1918_v58  ;;  %s6119_s24 = sld [smem:[#allocation16_spill]] }
 0x7b6   :  { %v1996_v60 = vmax.f32 %v1992_v59, 0.0 }
 0x7b8   :  { %v1998_v61 = vmul.f32 0.5, %v1996_v60  ;;  %2005 = vst.msk [vmem:[%s5476_s27] sm:$0xff] %vm2003_vm8, %v1996_v60  ;;  %s6127_s27 = sld [smem:[#allocation21_spill]] }
 0x7ba   :  { %v1999_v62 = vmul.f32 1.442695, %v1998_v61  ;;  %v2429_v50 = vld [vmem:[%s6119_s24 + $0x78] sm:$0xff]  ;;  %v2428_v52 = vld [vmem:[%s6119_s24 + $0x70] sm:$0xff]  ;;  %v2427_v54 = vld [vmem:[%s6119_s24 + $0x68] sm:$0xff] }
 0x7bb   :  { %v2426_v57 = vld [vmem:[%s6119_s24 + $0x60] sm:$0xff]  ;;  %v2425_v59 = vld [vmem:[%s6119_s24 + $0x58] sm:$0xff]  ;;  %v2424_v61 = vld [vmem:[%s6119_s24 + $0x50] sm:$0xff] }
 0x7bc   :  { %5241 = vpow2.f32 %v1999_v62 }
 0x7c9   :  { %v5242_v0 = vpop.eup %5241 }
 0x7ca   :  { %v2001_v1 = vmul.f32 %v5242_v0, %v1997_v63  ;;  %v2423_v63 = vld [vmem:[%s6119_s24 + $0x48] sm:$0xff] }
 0x7cc   :  { %v2002_v3 = vadd.f32 %v2001_v1, %v1995_v56  ;;  %v2422_v1 = vld [vmem:[%s6119_s24 + $0x40] sm:$0xff] }
 0x7ce   :  { %2006 = vst.msk [vmem:[%s5481_s9] sm:$0xff] %vm2003_vm8, %v2002_v3  ;;  %4849 = vmatprep.subr.mxu1 %v2002_v3  ;;  %s6118_s9 = sld [smem:[#allocation17_spill]] }
 0x7cf   :  { %4850 = vmatpush3.msra.mxu1 %v2002_v3 }
 0x7d0   :  { %4852 = vmatmul.mubr.msk.f32.vlgmr.msra.gmra.mxu1 %vm806_vm4, %v2008_v4  ;;  %v2421_v4 = vld [vmem:[%s6119_s24 + $0x38] sm:$0xff] }
 0x7d1   :  { %4854 = vmatprep.mubr.msk.f32.mxu1 %vm806_vm4, %v2009_v5 }
 0x7d4   :  { %4855 = vmatmul.mubr.msk.f32.gmra.mxu1 %vm806_vm4, %v2010_v6  ;;  %v2446_v35 = vld [vmem:[%s6118_s9] sm:$0xff]  ;;  %v2420_v6 = vld [vmem:[%s6119_s24 + $0x30] sm:$0xff] }
 0x7d5   :  { %4857 = vmatprep.mubr.msk.f32.mxu1 %vm806_vm4, %v2011_v7 }
 0x7d8   :  { %4858 = vmatmul.mubr.msk.f32.gmra.mxu1 %vm806_vm4, %v2012_v8  ;;  %v2419_v8 = vld [vmem:[%s6119_s24 + $0x28] sm:$0xff] }
 0x7d9   :  { %4860 = vmatprep.mubr.msk.f32.mxu1 %vm806_vm4, %v2013_v9 }
 0x7dc   :  { %4861 = vmatmul.mubr.msk.f32.gmra.mxu1 %vm806_vm4, %v2014_v10  ;;  %v2418_v10 = vld [vmem:[%s6119_s24 + $0x20] sm:$0xff] }
 0x7dd   :  { %4863 = vmatprep.mubr.msk.f32.mxu1 %vm806_vm4, %v2015_v11 }
 0x7e0   :  { %4864 = vmatmul.mubr.msk.f32.gmra.mxu1 %vm806_vm4, %v2016_v12  ;;  %v2417_v12 = vld [vmem:[%s6119_s24 + $0x18] sm:$0xff] }
 0x7e1   :  { %4866 = vmatprep.mubr.msk.f32.mxu1 %vm806_vm4, %v2017_v13 }
 0x7e4   :  { %4867 = vmatmul.mubr.msk.f32.gmra.mxu1 %vm806_vm4, %v2018_v14  ;;  %v2416_v14 = vld [vmem:[%s6119_s24 + $0x10] sm:$0xff] }
 0x7e5   :  { %4869 = vmatprep.mubr.msk.f32.mxu1 %vm806_vm4, %v2019_v15 }
 0x7e8   :  { %4870 = vmatmul.mubr.msk.f32.gmra.mxu1 %vm806_vm4, %v2020_v16  ;;  %v2415_v16 = vld [vmem:[%s6119_s24 + $0x8] sm:$0xff] }
 0x7e9   :  { %4872 = vmatprep.mubr.msk.f32.mxu1 %vm806_vm4, %v2021_v17 }
 0x7ec   :  { %4873 = vmatmul.mubr.msk.f32.gmra.mxu1 %vm806_vm4, %v2022_v18  ;;  %v2414_v18 = vld [vmem:[%s6119_s24] sm:$0xff] }
 0x7ed   :  { %4933 = vmatprep.mubr.f32.mxu1 %v2446_v35  ;;  %v2448_v35 = vld [vmem:[%s6121_s12] sm:$0xff] }
 0x890   :  { %v4853_v19 = vpop.f32.mrf.mxu1 }
 0x892   :  { %v2137_v20 = vpop.f32.mrf.mxu1 }
 0x893   :  { %4877 = vmatprep.mubr.msk.f32.mxu0 %vm2003_vm8, %v2137_v20 }
 0x894   :  { %v4856_v21 = vpop.f32.mrf.mxu1  ;;  %4878 = vmatmul.mubr.msk.f32.vlgmr.msra.gmra.mxu0 %vm2003_vm8, %v4853_v19 }
 0x896   :  { %v2147_v22 = vpop.f32.mrf.mxu1 }
 0x897   :  { %4880 = vmatprep.mubr.msk.f32.mxu0 %vm2003_vm8, %v2147_v22  ;;  %v2530_v22 = vld [vmem:[%s6120_s6 + $0x18] sm:$0xff] }
 0x898   :  { %v4859_v23 = vpop.f32.mrf.mxu1  ;;  %4881 = vmatmul.mubr.msk.f32.gmra.mxu0 %vm2003_vm8, %v4856_v21  ;;  %v2447_v21 = vld [vmem:[%s6118_s9 + $0x8] sm:$0xff] }
 0x89a   :  { %v2157_v24 = vpop.f32.mrf.mxu1 }
 0x89b   :  { %4883 = vmatprep.mubr.msk.f32.mxu0 %vm2003_vm8, %v2157_v24  ;;  %v2528_v24 = vld [vmem:[%s6120_s6 + $0x8] sm:$0xff] }
 0x89c   :  { %v4862_v25 = vpop.f32.mrf.mxu1  ;;  %4884 = vmatmul.mubr.msk.f32.gmra.mxu0 %vm2003_vm8, %v4859_v23  ;;  %v2529_v23 = vld [vmem:[%s6120_s6 + $0x10] sm:$0xff] }
 0x89e   :  { %v2167_v26 = vpop.f32.mrf.mxu1 }
 0x89f   :  { %4886 = vmatprep.mubr.msk.f32.mxu0 %vm2003_vm8, %v2167_v26  ;;  %v2619_v26 = vld [vmem:[%s5331_s21 + $0x38] sm:$0xff] }
 0x8a0   :  { %v4865_v27 = vpop.f32.mrf.mxu1  ;;  %4887 = vmatmul.mubr.msk.f32.gmra.mxu0 %vm2003_vm8, %v4862_v25  ;;  %v2527_v25 = vld [vmem:[%s6120_s6] sm:$0xff]  ;;  %4947 = vmatprep.subr.mxu0 %v2619_v26 }
 0x8a1   :  { %4948 = vmatpush3.msra.mxu0 %v2619_v26 }
 0x8a2   :  { %v2177_v28 = vpop.f32.mrf.mxu1 }
 0x8a3   :  { %4889 = vmatprep.mubr.msk.f32.mxu0 %vm2003_vm8, %v2177_v28  ;;  %v2708_v28 = vld [vmem:[%s5336_s25 + $0x38] sm:$0xff] }
 0x8a4   :  { %v4868_v29 = vpop.f32.mrf.mxu1  ;;  %4890 = vmatmul.mubr.msk.f32.gmra.mxu0 %vm2003_vm8, %v4865_v27  ;;  %v2618_v27 = vld [vmem:[%s5331_s21 + $0x30] sm:$0xff] }
 0x8a5   :  { %4949 = vmatprep.subr.mxu0 %v2618_v27 }
 0x8a6   :  { %v2187_v30 = vpop.f32.mrf.mxu1  ;;  %4950 = vmatpush3.msra.mxu0 %v2618_v27 }
 0x8a7   :  { %4892 = vmatprep.mubr.msk.f32.mxu0 %vm2003_vm8, %v2187_v30  ;;  %v2616_v30 = vld [vmem:[%s5331_s21 + $0x20] sm:$0xff] }
 0x8a8   :  { %v4871_v31 = vpop.f32.mrf.mxu1  ;;  %4893 = vmatmul.mubr.msk.f32.gmra.mxu0 %vm2003_vm8, %v4868_v29  ;;  %v2617_v29 = vld [vmem:[%s5331_s21 + $0x28] sm:$0xff] }
 0x8a9   :  { %4951 = vmatprep.subr.mxu0 %v2617_v29 }
 0x8aa   :  { %v2197_v32 = vpop.f32.mrf.mxu1  ;;  %4952 = vmatpush3.msra.mxu0 %v2617_v29 }
 0x8ab   :  { %4895 = vmatprep.mubr.msk.f32.mxu0 %vm2003_vm8, %v2197_v32  ;;  %4953 = vmatprep.subr.mxu0 %v2616_v30  ;;  %v2614_v32 = vld [vmem:[%s5331_s21 + $0x10] sm:$0xff] }
 0x8ac   :  { %v4874_v33 = vpop.f32.mrf.mxu1  ;;  %4896 = vmatmul.mubr.msk.f32.gmra.mxu0 %vm2003_vm8, %v4871_v31  ;;  %v2615_v31 = vld [vmem:[%s5331_s21 + $0x18] sm:$0xff] }
 0x8ad   :  { %4954 = vmatpush3.msra.mxu0 %v2616_v30 }
 0x8ae   :  { %v2207_v34 = vpop.f32.mrf.mxu1  ;;  %4955 = vmatprep.subr.mxu0 %v2615_v31 }
 0x8af   :  { %4898 = vmatprep.mubr.msk.f32.mxu0 %vm2003_vm8, %v2207_v34  ;;  %4956 = vmatpush3.msra.mxu0 %v2615_v31  ;;  %v3047_v31 = vpop.permute.xlu0 %3046 }
 0x8b0   :  { %4899 = vmatmul.mubr.msk.f32.gmra.mxu0 %vm2003_vm8, %v4874_v33  ;;  %4957 = vmatprep.subr.mxu0 %v2614_v32  ;;  %v2449_v33 = vld [vmem:[%s6121_s12 + $0x8] sm:$0xff] }
 0x8b1   :  { %4958 = vmatpush3.msra.mxu0 %v2614_v32 }
 0x954   :  { %v5868_v36 = vpop.f32.mrf.mxu0 }
 0x955   :  { %v2431_v19 = vmul.f32 %v5868_v36, %v2415_v16  ;;  %v3149_v16 = vld [vmem:[%s5321_s13 + $0x38] sm:$0xff] }
 0x956   :  { %v5870_v37 = vpop.f32.mrf.mxu0 }
 0x957   :  { %v2430_v20 = vmul.f32 %v2414_v18, %v5870_v37  ;;  %v3147_v18 = vld [vmem:[%s5321_s13 + $0x28] sm:$0xff] }
 0x958   :  { %v4882_v38 = vpop.f32.mrf.mxu0 }
 0x959   :  { %v2433_v15 = vmul.f32 %v4882_v38, %v2417_v12  ;;  %v3153_v12 = vld [vmem:[%s5321_s13 + $0x58] sm:$0xff] }
 0x95a   :  { %v5872_v39 = vpop.f32.mrf.mxu0 }
 0x95b   :  { %v2432_v17 = vmul.f32 %v2416_v14, %v5872_v39  ;;  %v3151_v14 = vld [vmem:[%s5321_s13 + $0x48] sm:$0xff] }
 0x95c   :  { %v4885_v40 = vpop.f32.mrf.mxu0 }
 0x95d   :  { %v2435_v11 = vmul.f32 %v4885_v40, %v2419_v8  ;;  %v3248_v8 = vld [vmem:[%s5326_s17 + $0x78] sm:$0xff] }
 0x95e   :  { %v2355_v41 = vpop.f32.mrf.mxu0 }
 0x95f   :  { %v2434_v13 = vmul.f32 %v2418_v10, %v2355_v41  ;;  %v2707_v41 = vld [vmem:[%s5336_s25 + $0x30] sm:$0xff]  ;;  %v3155_v10 = vld [vmem:[%s5321_s13 + $0x68] sm:$0xff] }
 0x960   :  { %v4888_v42 = vpop.f32.mrf.mxu0 }
 0x961   :  { %v2437_v7 = vmul.f32 %v4888_v42, %v2421_v4  ;;  %v2706_v42 = vld [vmem:[%s5336_s25 + $0x28] sm:$0xff] }
 0x962   :  { %v2365_v43 = vpop.f32.mrf.mxu0 }
 0x963   :  { %v2436_v9 = vmul.f32 %v2420_v6, %v2365_v43  ;;  %v2705_v43 = vld [vmem:[%s5336_s25 + $0x20] sm:$0xff] }
 0x964   :  { %v4891_v44 = vpop.f32.mrf.mxu0 }
 0x965   :  { %v2439_v3 = vmul.f32 %v4891_v44, %v2423_v63  ;;  %v2704_v44 = vld [vmem:[%s5336_s25 + $0x18] sm:$0xff] }
 0x966   :  { %v2375_v45 = vpop.f32.mrf.mxu0 }
 0x967   :  { %v2438_v5 = vmul.f32 %v2422_v1, %v2375_v45  ;;  %v2703_v45 = vld [vmem:[%s5336_s25 + $0x10] sm:$0xff] }
 0x968   :  { %v4894_v46 = vpop.f32.mrf.mxu0 }
 0x969   :  { %v2441_v62 = vmul.f32 %v4894_v46, %v2425_v59  ;;  %v2613_v46 = vld [vmem:[%s5331_s21 + $0x8] sm:$0xff]  ;;  %v4146_v59 = vld [vmem:[%s6122_s20 + $0x20] sm:$0xff] }
 0x96a   :  { %v2385_v47 = vpop.f32.mrf.mxu0  ;;  %4959 = vmatprep.subr.mxu0 %v2613_v46 }
 0x96b   :  { %v2440_v0 = vmul.f32 %v2424_v61, %v2385_v47  ;;  %v2702_v47 = vld [vmem:[%s5336_s25 + $0x8] sm:$0xff]  ;;  %4960 = vmatpush3.msra.mxu0 %v2613_v46  ;;  %v3239_v46 = vld [vmem:[%s5326_s17 + $0x30] sm:$0xff] }
 0x96c   :  { %v4897_v48 = vpop.f32.mrf.mxu0  ;;  %v4147_v61 = vld [vmem:[%s6122_s20 + $0x28] sm:$0xff] }
 0x96d   :  { %v2443_v58 = vmul.f32 %v4897_v48, %v2427_v54  ;;  %v2612_v48 = vld [vmem:[%s5331_s21] sm:$0xff]  ;;  %s6123_s21 = sld [smem:[#allocation9_spill]] }
 0x96e   :  { %v2395_v49 = vpop.f32.mrf.mxu0  ;;  %4961 = vmatprep.subr.mxu0 %v2612_v48 }
 0x96f   :  { %v2442_v60 = vmul.f32 %v2426_v57, %v2395_v49  ;;  %v2701_v49 = vld [vmem:[%s5336_s25] sm:$0xff]  ;;  %4962 = vmatpush3.msra.mxu0 %v2612_v48  ;;  %s6124_s25 = sld [smem:[#allocation7_spill]] }
 0x970   :  { %v4900_v51 = vpop.f32.mrf.mxu0  ;;  %v3237_v48 = vld [vmem:[%s5326_s17 + $0x20] sm:$0xff] }
 0x971   :  { %v2445_v53 = vmul.f32 %v4900_v51, %v2429_v50 }
 0x972   :  { %v2405_v55 = vpop.f32.mrf.mxu0 }
 0x973   :  { %v2444_v56 = vmul.f32 %v2428_v52, %v2405_v55  ;;  %4901 = vmatprep.subr.mxu1 %v2445_v53  ;;  %v4140_v52 = vld [vmem:[%s6122_s20 + $0x10] sm:$0xff]  ;;  %v4141_v55 = vld [vmem:[%s6122_s20 + $0x18] sm:$0xff]  ;;  %v3057_v1 = vld [vmem:[%s6123_s21 + $0x20] sm:$0xff] }
 0x974   :  { %4902 = vmatpush3.msra.mxu1 %v2445_v53  ;;  %v3059_v63 = vld [vmem:[%s6123_s21 + $0x30] sm:$0xff]  ;;  %v3053_v6 = vld [vmem:[%s6123_s21] sm:$0xff] }
 0x975   :  { %4903 = vmatprep.subr.mxu1 %v2444_v56  ;;  %v3055_v4 = vld [vmem:[%s6123_s21 + $0x10] sm:$0xff] }
 0x976   :  { %4904 = vmatpush3.msra.mxu1 %v2444_v56  ;;  %v2784_v56 = vld [vmem:[%s6122_s20] sm:$0xff] }
 0x977   :  { %4905 = vmatprep.subr.mxu1 %v2443_v58 }
 0x978   :  { %4906 = vmatpush3.msra.mxu1 %v2443_v58  ;;  %v2785_v58 = vld [vmem:[%s6122_s20 + $0x8] sm:$0xff] }
 0x979   :  { %4907 = vmatprep.subr.mxu1 %v2442_v60 }
 0x97a   :  { %4908 = vmatpush3.msra.mxu1 %v2442_v60 }
 0x97b   :  { %4909 = vmatprep.subr.mxu1 %v2441_v62 }
 0x97c   :  { %4910 = vmatpush3.msra.mxu1 %v2441_v62  ;;  %v3060_v62 = vld [vmem:[%s6123_s21 + $0x38] sm:$0xff] }
 0x97d   :  { %4911 = vmatprep.subr.mxu1 %v2440_v0 }
 0x97e   :  { %4912 = vmatpush3.msra.mxu1 %v2440_v0  ;;  %v3058_v0 = vld [vmem:[%s6123_s21 + $0x28] sm:$0xff] }
 0x97f   :  { %4913 = vmatprep.subr.mxu1 %v2439_v3 }
 0x980   :  { %4914 = vmatpush3.msra.mxu1 %v2439_v3  ;;  %v3056_v3 = vld [vmem:[%s6123_s21 + $0x18] sm:$0xff] }
 0x981   :  { %4915 = vmatprep.subr.mxu1 %v2438_v5 }
 0x982   :  { %4916 = vmatpush3.msra.mxu1 %v2438_v5  ;;  %v3054_v5 = vld [vmem:[%s6123_s21 + $0x8] sm:$0xff] }
 0x983   :  { %4917 = vmatprep.subr.mxu1 %v2437_v7 }
 0x984   :  { %4918 = vmatpush3.msra.mxu1 %v2437_v7  ;;  %v3157_v7 = vld [vmem:[%s5321_s13 + $0x78] sm:$0xff] }
 0x985   :  { %4919 = vmatprep.subr.mxu1 %v2436_v9 }
 0x986   :  { %4920 = vmatpush3.msra.mxu1 %v2436_v9  ;;  %v3156_v9 = vld [vmem:[%s5321_s13 + $0x70] sm:$0xff] }
 0x987   :  { %4921 = vmatprep.subr.mxu1 %v2435_v11 }
 0x988   :  { %4922 = vmatpush3.msra.mxu1 %v2435_v11  ;;  %v3154_v11 = vld [vmem:[%s5321_s13 + $0x60] sm:$0xff] }
 0x989   :  { %4923 = vmatprep.subr.mxu1 %v2434_v13 }
 0x98a   :  { %4924 = vmatpush3.msra.mxu1 %v2434_v13  ;;  %v3152_v13 = vld [vmem:[%s5321_s13 + $0x50] sm:$0xff] }
 0x98b   :  { %4925 = vmatprep.subr.mxu1 %v2433_v15 }
 0x98c   :  { %4926 = vmatpush3.msra.mxu1 %v2433_v15  ;;  %v3150_v15 = vld [vmem:[%s5321_s13 + $0x40] sm:$0xff] }
 0x98d   :  { %4927 = vmatprep.subr.mxu1 %v2432_v17 }
 0x98e   :  { %4928 = vmatpush3.msra.mxu1 %v2432_v17  ;;  %v3148_v17 = vld [vmem:[%s5321_s13 + $0x30] sm:$0xff] }
 0x98f   :  { %4929 = vmatprep.subr.mxu1 %v2431_v19 }
 0x990   :  { %4930 = vmatpush3.msra.mxu1 %v2431_v19  ;;  %v3146_v19 = vld [vmem:[%s5321_s13 + $0x20] sm:$0xff] }
 0x991   :  { %4931 = vmatprep.subr.mxu1 %v2430_v20 }
 0x992   :  { %4932 = vmatpush3.msra.mxu1 %v2430_v20  ;;  %v3145_v20 = vld [vmem:[%s5321_s13 + $0x18] sm:$0xff] }
 0x993   :  { %4934 = vmatmul.mubr.f32.vlgmr.msra.gmra.mxu1 %v2447_v21  ;;  %4936 = vmatprep.subr.mxu1 %v2530_v22  ;;  %v3144_v21 = vld [vmem:[%s5321_s13 + $0x10] sm:$0xff] }
 0x994   :  { %4937 = vmatpush3.msra.mxu1 %v2530_v22 }
 0x995   :  { %4938 = vmatprep.subr.mxu1 %v2529_v23 }
 0x996   :  { %4939 = vmatpush3.msra.mxu1 %v2529_v23 }
 0x997   :  { %4940 = vmatprep.subr.mxu1 %v2528_v24 }
 0x998   :  { %4941 = vmatpush3.msra.mxu1 %v2528_v24 }
 0x999   :  { %4942 = vmatprep.subr.mxu1 %v2527_v25 }
 0x99a   :  { %4943 = vmatpush3.msra.mxu1 %v2527_v25 }
 0x99b   :  { %4966 = vmatprep.subr.mxu1 %v2708_v28 }
 0xa53   :  { %v4935_v34 = vpop.f32.mrf.mxu1 }
 0xa54   :  { %v2522_v36 = vadd.f32 %v4935_v34, %v2449_v33  ;;  %v3042_v33 = vpop.permute.xlu1 %3041 }
 0xa55   :  { %v2516_v37 = vpop.f32.mrf.mxu1 }
 0xa56   :  { %v2517_v38 = vadd.f32 %v2516_v37, %v2448_v35  ;;  %v2526_v40 = vmax.f32 %v2522_v36, 0.0 }
 0xa58   :  { %v2525_v39 = vmax.f32 %v2517_v38, 0.0  ;;  %v3247_v38 = vld [vmem:[%s5326_s17 + $0x70] sm:$0xff] }
 0xa5a   :  { %4944 = vmatprep.mubr.msk.f32.mxu1 %vm1582_vm6, %v2525_v39  ;;  %v3246_v39 = vld [vmem:[%s5326_s17 + $0x68] sm:$0xff] }
 0xa5b   :  { %4945 = vmatmul.mubr.msk.f32.vlgmr.msra.gmra.mxu1 %vm1582_vm6, %v2526_v40  ;;  %v3245_v40 = vld [vmem:[%s5326_s17 + $0x60] sm:$0xff] }
 0xa5c   :  { %4967 = vmatpush3.msra.mxu1 %v2708_v28 }
 0xa5d   :  { %4968 = vmatprep.subr.mxu1 %v2707_v41 }
 0xa5e   :  { %4969 = vmatpush3.msra.mxu1 %v2707_v41  ;;  %v3244_v41 = vld [vmem:[%s5326_s17 + $0x58] sm:$0xff] }
 0xa5f   :  { %4970 = vmatprep.subr.mxu1 %v2706_v42 }
 0xa60   :  { %4971 = vmatpush3.msra.mxu1 %v2706_v42  ;;  %v3243_v42 = vld [vmem:[%s5326_s17 + $0x50] sm:$0xff] }
 0xa61   :  { %4972 = vmatprep.subr.mxu1 %v2705_v43 }
 0xa62   :  { %4973 = vmatpush3.msra.mxu1 %v2705_v43  ;;  %v3242_v43 = vld [vmem:[%s5326_s17 + $0x48] sm:$0xff] }
 0xa63   :  { %4974 = vmatprep.subr.mxu1 %v2704_v44 }
 0xa64   :  { %4975 = vmatpush3.msra.mxu1 %v2704_v44  ;;  %v3241_v44 = vld [vmem:[%s5326_s17 + $0x40] sm:$0xff] }
 0xa65   :  { %4976 = vmatprep.subr.mxu1 %v2703_v45 }
 0xa66   :  { %4977 = vmatpush3.msra.mxu1 %v2703_v45  ;;  %v3240_v45 = vld [vmem:[%s5326_s17 + $0x38] sm:$0xff] }
 0xa67   :  { %4978 = vmatprep.subr.mxu1 %v2702_v47 }
 0xa68   :  { %4979 = vmatpush3.msra.mxu1 %v2702_v47  ;;  %v3238_v47 = vld [vmem:[%s5326_s17 + $0x28] sm:$0xff] }
 0xa69   :  { %4980 = vmatprep.subr.mxu1 %v2701_v49 }
 0xa6a   :  { %4981 = vmatpush3.msra.mxu1 %v2701_v49  ;;  %v3236_v49 = vld [vmem:[%s5326_s17 + $0x18] sm:$0xff] }
 0xa6b   :  { %5025 = vmatprep.subr.mxu1 %v3157_v7 }
 0xb1b   :  { %v4946_v50 = vpop.f32.mrf.mxu1 }
 0xb1d   :  { %v2603_v51 = vpop.f32.mrf.mxu1 }
 0xb1e   :  { %4963 = vmatprep.mubr.msk.f32.mxu0 %vm649_vm3, %v2603_v51  ;;  %4982 = vmatprep.mubr.msk.f32.mxu1 %vm649_vm3, %v2603_v51 }
 0xb1f   :  { %4964 = vmatmul.mubr.msk.f32.vlgmr.msra.gmra.mxu0 %vm649_vm3, %v4946_v50  ;;  %4983 = vmatmul.mubr.msk.f32.vlgmr.msra.gmra.mxu1 %vm649_vm3, %v4946_v50 }
 0xb20   :  { %4989 = vmatprep.mubr.msk.f32.mxu0 %vm1192_vm5, %v4140_v52  ;;  %5026 = vmatpush3.msra.mxu1 %v3157_v7  ;;  %v3234_v52 = vld [vmem:[%s5326_s17 + $0x8] sm:$0xff] }
 0xb21   :  { %5027 = vmatprep.subr.mxu1 %v3156_v9 }
 0xb22   :  { %5028 = vmatpush3.msra.mxu1 %v3156_v9 }
 0xb23   :  { %5029 = vmatprep.subr.mxu1 %v3155_v10 }
 0xb24   :  { %5030 = vmatpush3.msra.mxu1 %v3155_v10 }
 0xb25   :  { %5031 = vmatprep.subr.mxu1 %v3154_v11 }
 0xb26   :  { %5032 = vmatpush3.msra.mxu1 %v3154_v11 }
 0xb27   :  { %5033 = vmatprep.subr.mxu1 %v3153_v12 }
 0xb28   :  { %5034 = vmatpush3.msra.mxu1 %v3153_v12 }
 0xb29   :  { %5035 = vmatprep.subr.mxu1 %v3152_v13 }
 0xb2a   :  { %5036 = vmatpush3.msra.mxu1 %v3152_v13 }
 0xb2b   :  { %5037 = vmatprep.subr.mxu1 %v3151_v14 }
 0xb2c   :  { %5038 = vmatpush3.msra.mxu1 %v3151_v14 }
 0xb2d   :  { %5039 = vmatprep.subr.mxu1 %v3150_v15 }
 0xb2e   :  { %5040 = vmatpush3.msra.mxu1 %v3150_v15 }
 0xb2f   :  { %5041 = vmatprep.subr.mxu1 %v3149_v16 }
 0xb30   :  { %5042 = vmatpush3.msra.mxu1 %v3149_v16 }
 0xb31   :  { %5043 = vmatprep.subr.mxu1 %v3148_v17 }
 0xb32   :  { %5044 = vmatpush3.msra.mxu1 %v3148_v17 }
 0xb33   :  { %5045 = vmatprep.subr.mxu1 %v3147_v18 }
 0xb34   :  { %5046 = vmatpush3.msra.mxu1 %v3147_v18 }
 0xb35   :  { %5047 = vmatprep.subr.mxu1 %v3146_v19 }
 0xb36   :  { %5048 = vmatpush3.msra.mxu1 %v3146_v19  ;;  %v3649_v19 = vld [vmem:[%s6124_s25 + $0x30] sm:$0xff] }
 0xb37   :  { %5049 = vmatprep.subr.mxu1 %v3145_v20 }
 0xb38   :  { %5050 = vmatpush3.msra.mxu1 %v3145_v20 }
 0xb39   :  { %5051 = vmatprep.subr.mxu1 %v3144_v21 }
 0xb3a   :  { %5052 = vmatpush3.msra.mxu1 %v3144_v21  ;;  %v3648_v21 = vld [vmem:[%s6124_s25 + $0x28] sm:$0xff] }
 0xbdf   :  { %v4965_v53 = vpop.f32.mrf.mxu0  ;;  %v4984_v57 = vpop.f32.mrf.mxu1 }
 0xbe0   :  { %4985 = vmatprep.subr.mxu0 %v4965_v53 }
 0xbe1   :  { %v2692_v54 = vpop.f32.mrf.mxu0  ;;  %4986 = vmatpush3.msra.mxu0 %v4965_v53  ;;  %v2775_v60 = vpop.f32.mrf.mxu1  ;;  %v3142_v53 = vld [vmem:[%s5321_s13] sm:$0xff] }
 0xbe2   :  { %4987 = vmatprep.subr.mxu0 %v2692_v54 }
 0xbe3   :  { %4988 = vmatpush3.msra.mxu0 %v2692_v54  ;;  %v3233_v54 = vld [vmem:[%s5326_s17] sm:$0xff] }
 0xbe4   :  { %4990 = vmatmul.mubr.msk.f32.vlgmr.msra.gmra.mxu0 %vm1192_vm5, %v4141_v55  ;;  %4992 = vmatprep.subr.mxu0 %v4946_v50 }
 0xbe5   :  { %4993 = vmatpush3.msra.mxu0 %v4946_v50  ;;  %4996 = vmatprep.mubr.msk.f32.mxu0 %vm1192_vm5, %v2784_v56  ;;  %v3235_v50 = vld [vmem:[%s5326_s17 + $0x10] sm:$0xff]  ;;  %s6126_s17 = sld [smem:[#allocation6_spill]] }
 0xbe6   :  { %4994 = vmatprep.subr.mxu0 %v2603_v51 }
 0xbe7   :  { %4995 = vmatpush3.msra.mxu0 %v2603_v51  ;;  %v3143_v51 = vld [vmem:[%s5321_s13 + $0x8] sm:$0xff]  ;;  %s6125_s13 = sld [smem:[#allocation20_spill]] }
 0xbe8   :  { %4997 = vmatmul.mubr.msk.f32.vlgmr.msra.gmra.mxu0 %vm1192_vm5, %v2785_v58  ;;  %4999 = vmatprep.subr.mxu0 %v4984_v57  ;;  %v3657_v58 = vld [vmem:[%s6124_s25 + $0x70] sm:$0xff] }
 0xbe9   :  { %5000 = vmatpush3.msra.mxu0 %v4984_v57  ;;  %5003 = vmatprep.mubr.msk.f32.mxu0 %vm1192_vm5, %v4146_v59  ;;  %v3658_v57 = vld [vmem:[%s6124_s25 + $0x78] sm:$0xff]  ;;  %v3656_v59 = vld [vmem:[%s6124_s25 + $0x68] sm:$0xff] }
 0xbea   :  { %5001 = vmatprep.subr.mxu0 %v2775_v60  ;;  %5053 = vmatprep.subr.mxu1 %v3143_v51 }
 0xbeb   :  { %5002 = vmatpush3.msra.mxu0 %v2775_v60  ;;  %5054 = vmatpush3.msra.mxu1 %v3143_v51  ;;  %v3655_v60 = vld [vmem:[%s6124_s25 + $0x60] sm:$0xff]  ;;  %v3572_v10 = vld [vmem:[%s6126_s17 + $0x78] sm:$0xff]  ;;  %v3571_v11 = vld [vmem:[%s6126_s17 + $0x70] sm:$0xff] }
 0xbec   :  { %5004 = vmatmul.mubr.msk.f32.vlgmr.msra.gmra.mxu0 %vm1192_vm5, %v4147_v61  ;;  %5006 = vmatprep.subr.mxu0 %v3060_v62  ;;  %v3654_v61 = vld [vmem:[%s6124_s25 + $0x58] sm:$0xff]  ;;  %v3570_v12 = vld [vmem:[%s6126_s17 + $0x68] sm:$0xff]  ;;  %v3569_v13 = vld [vmem:[%s6126_s17 + $0x60] sm:$0xff] }
 0xbed   :  { %5007 = vmatpush3.msra.mxu0 %v3060_v62  ;;  %5055 = vmatprep.subr.mxu1 %v3142_v53  ;;  %v3653_v62 = vld [vmem:[%s6124_s25 + $0x50] sm:$0xff]  ;;  %v3568_v14 = vld [vmem:[%s6126_s17 + $0x58] sm:$0xff]  ;;  %v3566_v16 = vld [vmem:[%s6126_s17 + $0x48] sm:$0xff] }
 0xbee   :  { %5008 = vmatprep.subr.mxu0 %v3059_v63  ;;  %5056 = vmatpush3.msra.mxu1 %v3142_v53  ;;  %v3567_v15 = vld [vmem:[%s6126_s17 + $0x50] sm:$0xff]  ;;  %v3565_v17 = vld [vmem:[%s6126_s17 + $0x40] sm:$0xff]  ;;  %v3564_v18 = vld [vmem:[%s6126_s17 + $0x38] sm:$0xff] }
 0xbef   :  { %5009 = vmatpush3.msra.mxu0 %v3059_v63  ;;  %5095 = vmatprep.subr.mxu1 %v5299_v2  ;;  %v3652_v63 = vld [vmem:[%s6124_s25 + $0x48] sm:$0xff]  ;;  %v3563_v20 = vld [vmem:[%s6126_s17 + $0x30] sm:$0xff] }
 0xbf0   :  { %5010 = vmatprep.subr.mxu0 %v3058_v0 }
 0xbf1   :  { %5011 = vmatpush3.msra.mxu0 %v3058_v0  ;;  %v3651_v0 = vld [vmem:[%s6124_s25 + $0x40] sm:$0xff] }
 0xbf2   :  { %5012 = vmatprep.subr.mxu0 %v3057_v1 }
 0xbf3   :  { %5013 = vmatpush3.msra.mxu0 %v3057_v1  ;;  %v3650_v1 = vld [vmem:[%s6124_s25 + $0x38] sm:$0xff] }
 0xbf4   :  { %5014 = vmatprep.subr.mxu0 %v3056_v3 }
 0xbf5   :  { %5015 = vmatpush3.msra.mxu0 %v3056_v3 }
 0xbf6   :  { %5016 = vmatprep.subr.mxu0 %v3055_v4 }
 0xbf7   :  { %5017 = vmatpush3.msra.mxu0 %v3055_v4  ;;  %v4152_v4 = vld [vmem:[%s6125_s13 + $0x8] sm:$0xff] }
 0xbf8   :  { %5018 = vmatprep.subr.mxu0 %v3054_v5 }
 0xbf9   :  { %5019 = vmatpush3.msra.mxu0 %v3054_v5 }
 0xbfa   :  { %5020 = vmatprep.subr.mxu0 %v3053_v6 }
 0xbfb   :  { %5021 = vmatpush3.msra.mxu0 %v3053_v6  ;;  %v3324_v6 = vld [vmem:[%s6125_s13] sm:$0xff] }
 0xbfc   :  { %5060 = vmatprep.subr.mxu0 %v3248_v8 }
 0xca4   :  { %v4991_v22 = vpop.f32.mrf.mxu0 }
 0xca6   :  { %v2861_v23 = vpop.f32.mrf.mxu0 }
 0xca8   :  { %v4998_v24 = vpop.f32.mrf.mxu0 }
 0xca9   :  { %v2948_v26 = vadd.f32 %v4998_v24, %v4991_v22  ;;  %v3562_v22 = vld [vmem:[%s6126_s17 + $0x28] sm:$0xff]  ;;  %v3561_v24 = vld [vmem:[%s6126_s17 + $0x20] sm:$0xff] }
 0xcaa   :  { %v2942_v25 = vpop.f32.mrf.mxu0 }
 0xcab   :  { %v2943_v28 = vadd.f32 %v2942_v25, %v2861_v23  ;;  %v3647_v23 = vld [vmem:[%s6124_s25 + $0x20] sm:$0xff]  ;;  %v3646_v25 = vld [vmem:[%s6124_s25 + $0x18] sm:$0xff] }
 0xcac   :  { %v5005_v27 = vpop.f32.mrf.mxu0 }
 0xcad   :  { %v3036_v29 = vadd.f32 %v5005_v27, %v2948_v26  ;;  %v3560_v26 = vld [vmem:[%s6126_s17 + $0x18] sm:$0xff]  ;;  %v3645_v27 = vld [vmem:[%s6124_s25 + $0x10] sm:$0xff] }
 0xcae   :  { %v3026_v30 = vpop.f32.mrf.mxu0 }
 0xcaf   :  { %v3035_v32 = vadd.f32 %v3026_v30, %v2943_v28  ;;  %v3050_v34 = vadd.f32 %v3047_v31, %v3036_v29  ;;  %v3559_v28 = vld [vmem:[%s6126_s17 + $0x10] sm:$0xff]  ;;  %v3644_v29 = vld [vmem:[%s6124_s25 + $0x8] sm:$0xff]  ;;  %v3643_v31 = vld [vmem:[%s6124_s25] sm:$0xff] }
 0xcb0   :  { %v3558_v30 = vld [vmem:[%s6126_s17 + $0x8] sm:$0xff] }
 0xcb1   :  { %v3049_v35 = vadd.f32 %v3042_v33, %v3035_v32  ;;  %v3052_v37 = vmax.f32 %v3050_v34, 0.0  ;;  %v3557_v32 = vld [vmem:[%s6126_s17] sm:$0xff] }
 0xcb3   :  { %v3051_v36 = vmax.f32 %v3049_v35, 0.0 }
 0xcb5   :  { %5022 = vmatprep.mubr.msk.f32.mxu0 %vm649_vm3, %v3051_v36 }
 0xcb6   :  { %5023 = vmatmul.mubr.msk.f32.vlgmr.msra.gmra.mxu0 %vm649_vm3, %v3052_v37 }
 0xcb7   :  { %5061 = vmatpush3.msra.mxu0 %v3248_v8  ;;  %v4155_v8 = vld [vmem:[%s6125_s13 + $0x10] sm:$0xff] }
 0xcb8   :  { %5062 = vmatprep.subr.mxu0 %v3247_v38 }
 0xcb9   :  { %5063 = vmatpush3.msra.mxu0 %v3247_v38 }
 0xcba   :  { %5064 = vmatprep.subr.mxu0 %v3246_v39 }
 0xcbb   :  { %5065 = vmatpush3.msra.mxu0 %v3246_v39 }
 0xcbc   :  { %5066 = vmatprep.subr.mxu0 %v3245_v40 }
 0xcbd   :  { %5067 = vmatpush3.msra.mxu0 %v3245_v40  ;;  %v3553_v40 = vpop.permute.xlu1 %3552 }
 0xcbe   :  { %5068 = vmatprep.subr.mxu0 %v3244_v41 }
 0xcbf   :  { %5069 = vmatpush3.msra.mxu0 %v3244_v41 }
 0xcc0   :  { %5070 = vmatprep.subr.mxu0 %v3243_v42 }
 0xcc1   :  { %5071 = vmatpush3.msra.mxu0 %v3243_v42 }
 0xcc2   :  { %5072 = vmatprep.subr.mxu0 %v3242_v43 }
 0xcc3   :  { %5073 = vmatpush3.msra.mxu0 %v3242_v43 }
 0xcc4   :  { %5074 = vmatprep.subr.mxu0 %v3241_v44 }
 0xcc5   :  { %5075 = vmatpush3.msra.mxu0 %v3241_v44  ;;  %v3729_v44 = vld [vmem:[%s6127_s27] sm:$0x7] }
 0xcc6   :  { %5076 = vmatprep.subr.mxu0 %v3240_v45 }
 0xcc7   :  { %5077 = vmatpush3.msra.mxu0 %v3240_v45  ;;  %v4157_v45 = vld [vmem:[%s6127_s27 + $0x4] sm:$0x7] }
 0xcc8   :  { %5078 = vmatprep.subr.mxu0 %v3239_v46 }
 0xcc9   :  { %5079 = vmatpush3.msra.mxu0 %v3239_v46 }
 0xcca   :  { %5080 = vmatprep.subr.mxu0 %v3238_v47 }
 0xccb   :  { %5081 = vmatpush3.msra.mxu0 %v3238_v47 }
 0xccc   :  { %5082 = vmatprep.subr.mxu0 %v3237_v48 }
 0xccd   :  { %5083 = vmatpush3.msra.mxu0 %v3237_v48 }
 0xcce   :  { %5084 = vmatprep.subr.mxu0 %v3236_v49 }
 0xccf   :  { %5085 = vmatpush3.msra.mxu0 %v3236_v49 }
 0xcd0   :  { %5086 = vmatprep.subr.mxu0 %v3235_v50 }
 0xcd1   :  { %5087 = vmatpush3.msra.mxu0 %v3235_v50  ;;  %v4160_v50 = vld [vmem:[%s6127_s27 + $0x8] sm:$0x7] }
 0xcd2   :  { %5088 = vmatprep.subr.mxu0 %v3234_v52 }
 0xcd3   :  { %5089 = vmatpush3.msra.mxu0 %v3234_v52 }
 0xcd4   :  { %5090 = vmatprep.subr.mxu0 %v3233_v54 }
 0xcd5   :  { %5091 = vmatpush3.msra.mxu0 %v3233_v54 }
 0xcd6   :  { %5151 = vmatprep.subr.mxu0 %v5299_v2 }
 0xd76   :  { %v5024_v55 = vpop.f32.mrf.mxu0 }
 0xd78   :  { %v3133_v56 = vpop.f32.mrf.mxu0 }
 0xd79   :  { %5057 = vmatprep.mubr.f32.mxu1 %v3133_v56  ;;  %5092 = vmatprep.mubr.f32.mxu0 %v3133_v56 }
 0xd7a   :  { %5058 = vmatmul.mubr.f32.vlgmr.msra.gmra.mxu1 %v5024_v55  ;;  %5093 = vmatmul.mubr.f32.vlgmr.msra.gmra.mxu0 %v5024_v55 }
 0xd7b   :  { %5099 = vmatprep.mubr.msk.f32.mxu1 %vm5300_vm0, %v5299_v2  ;;  %5183 = vmatprep.mubr.msk.f32.mxu0 %vm5300_vm0, %v5299_v2 }
 0xd7c   :  { %5152 = vmatpush3.msra.mxu0 %v3658_v57 }
 0xd7d   :  { %5153 = vmatprep.subr.mxu0 %v5299_v2 }
 0xd7e   :  { %5154 = vmatpush3.msra.mxu0 %v3657_v58 }
 0xd7f   :  { %5155 = vmatprep.subr.mxu0 %v5299_v2 }
 0xd80   :  { %5156 = vmatpush3.msra.mxu0 %v3656_v59 }
 0xd81   :  { %5157 = vmatprep.subr.mxu0 %v5299_v2 }
 0xd82   :  { %5158 = vmatpush3.msra.mxu0 %v3655_v60 }
 0xd83   :  { %5159 = vmatprep.subr.mxu0 %v5299_v2 }
 0xd84   :  { %5160 = vmatpush3.msra.mxu0 %v3654_v61 }
 0xd85   :  { %5161 = vmatprep.subr.mxu0 %v5299_v2 }
 0xd86   :  { %5162 = vmatpush3.msra.mxu0 %v3653_v62 }
 0xd87   :  { %5163 = vmatprep.subr.mxu0 %v5299_v2 }
 0xd88   :  { %5164 = vmatpush3.msra.mxu0 %v3652_v63 }
 0xd89   :  { %5165 = vmatprep.subr.mxu0 %v5299_v2 }
 0xd8a   :  { %5166 = vmatpush3.msra.mxu0 %v3651_v0 }
 0xd8b   :  { %5167 = vmatprep.subr.mxu0 %v5299_v2 }
 0xd8c   :  { %5168 = vmatpush3.msra.mxu0 %v3650_v1 }
 0xd8d   :  { %5169 = vmatprep.subr.mxu0 %v5299_v2 }
 0xd8e   :  { %5170 = vmatpush3.msra.mxu0 %v3649_v19 }
 0xd8f   :  { %5171 = vmatprep.subr.mxu0 %v5299_v2 }
 0xd90   :  { %5172 = vmatpush3.msra.mxu0 %v3648_v21 }
 0xd91   :  { %5173 = vmatprep.subr.mxu0 %v5299_v2 }
 0xd92   :  { %5174 = vmatpush3.msra.mxu0 %v3647_v23 }
 0xd93   :  { %5175 = vmatprep.subr.mxu0 %v5299_v2 }
 0xd94   :  { %5176 = vmatpush3.msra.mxu0 %v3646_v25 }
 0xd95   :  { %5177 = vmatprep.subr.mxu0 %v5299_v2 }
 0xd96   :  { %5178 = vmatpush3.msra.mxu0 %v3645_v27 }
 0xd97   :  { %5179 = vmatprep.subr.mxu0 %v5299_v2 }
 0xd98   :  { %5180 = vmatpush3.msra.mxu0 %v3644_v29 }
 0xd99   :  { %5181 = vmatprep.subr.mxu0 %v5299_v2 }
 0xd9a   :  { %5182 = vmatpush3.msra.mxu0 %v3643_v31 }
 0xd9b   :  { %5191 = vmatprep.subr.mxu0 %v5299_v2 }
 0xe3a   :  { %v5059_v3 = vpop.f32.mrf.mxu1  ;;  %v5094_v7 = vpop.f32.mrf.mxu0 }
 0xe3b   :  { %5096 = vmatpush3.msra.mxu1 %v5059_v3 }
 0xe3c   :  { %v3224_v5 = vpop.f32.mrf.mxu1  ;;  %5097 = vmatprep.subr.mxu1 %v5299_v2  ;;  %v3315_v9 = vpop.f32.mrf.mxu0 }
 0xe3d   :  { %5098 = vmatpush3.msra.mxu1 %v3224_v5 }
 0xe3e   :  { %5100 = vmatmul.mubr.msk.f32.vlgmr.msra.gmra.mxu1 %vm1192_vm5, %v4152_v4  ;;  %5102 = vmatprep.subr.mxu1 %v5299_v2 }
 0xe3f   :  { %5103 = vmatpush3.msra.mxu1 %v5024_v55  ;;  %5106 = vmatprep.mubr.msk.f32.mxu1 %vm5300_vm0, %v5299_v2 }
 0xe40   :  { %5104 = vmatprep.subr.mxu1 %v5299_v2 }
 0xe41   :  { %5105 = vmatpush3.msra.mxu1 %v3133_v56 }
 0xe42   :  { %5107 = vmatmul.mubr.msk.f32.vlgmr.msra.gmra.mxu1 %vm1192_vm5, %v3324_v6  ;;  %5109 = vmatprep.subr.mxu1 %v5299_v2 }
 0xe43   :  { %5110 = vmatpush3.msra.mxu1 %v5094_v7  ;;  %5113 = vmatprep.mubr.msk.f32.mxu1 %vm5300_vm0, %v5299_v2 }
 0xe44   :  { %5111 = vmatprep.subr.mxu1 %v5299_v2 }
 0xe45   :  { %5112 = vmatpush3.msra.mxu1 %v3315_v9 }
 0xe46   :  { %5114 = vmatmul.mubr.msk.f32.vlgmr.msra.gmra.mxu1 %vm1192_vm5, %v4155_v8  ;;  %5116 = vmatprep.subr.mxu1 %v5299_v2 }
 0xe47   :  { %5117 = vmatpush3.msra.mxu1 %v3572_v10  ;;  %5148 = vmatprep.mubr.msk.f32.mxu1 %vm5300_vm0, %v5299_v2 }
 0xe48   :  { %5118 = vmatprep.subr.mxu1 %v5299_v2 }
 0xe49   :  { %5119 = vmatpush3.msra.mxu1 %v3571_v11 }
 0xe4a   :  { %5120 = vmatprep.subr.mxu1 %v5299_v2 }
 0xe4b   :  { %5121 = vmatpush3.msra.mxu1 %v3570_v12 }
 0xe4c   :  { %5122 = vmatprep.subr.mxu1 %v5299_v2 }
 0xe4d   :  { %5123 = vmatpush3.msra.mxu1 %v3569_v13 }
 0xe4e   :  { %5124 = vmatprep.subr.mxu1 %v5299_v2 }
 0xe4f   :  { %5125 = vmatpush3.msra.mxu1 %v3568_v14 }
 0xe50   :  { %5126 = vmatprep.subr.mxu1 %v5299_v2 }
 0xe51   :  { %5127 = vmatpush3.msra.mxu1 %v3567_v15 }
 0xe52   :  { %5128 = vmatprep.subr.mxu1 %v5299_v2 }
 0xe53   :  { %5129 = vmatpush3.msra.mxu1 %v3566_v16 }
 0xe54   :  { %5130 = vmatprep.subr.mxu1 %v5299_v2 }
 0xe55   :  { %5131 = vmatpush3.msra.mxu1 %v3565_v17 }
 0xe56   :  { %5132 = vmatprep.subr.mxu1 %v5299_v2 }
 0xe57   :  { %5133 = vmatpush3.msra.mxu1 %v3564_v18 }
 0xe58   :  { %5134 = vmatprep.subr.mxu1 %v5299_v2 }
 0xe59   :  { %5135 = vmatpush3.msra.mxu1 %v3563_v20 }
 0xe5a   :  { %5136 = vmatprep.subr.mxu1 %v5299_v2 }
 0xe5b   :  { %5137 = vmatpush3.msra.mxu1 %v3562_v22 }
 0xe5c   :  { %5138 = vmatprep.subr.mxu1 %v5299_v2 }
 0xe5d   :  { %5139 = vmatpush3.msra.mxu1 %v3561_v24 }
 0xe5e   :  { %5140 = vmatprep.subr.mxu1 %v5299_v2 }
 0xe5f   :  { %5141 = vmatpush3.msra.mxu1 %v3560_v26 }
 0xe60   :  { %5142 = vmatprep.subr.mxu1 %v5299_v2 }
 0xe61   :  { %5143 = vmatpush3.msra.mxu1 %v3559_v28 }
 0xe62   :  { %5144 = vmatprep.subr.mxu1 %v5299_v2 }
 0xe63   :  { %5145 = vmatpush3.msra.mxu1 %v3558_v30 }
 0xe64   :  { %5146 = vmatprep.subr.mxu1 %v5299_v2 }
 0xe65   :  { %5147 = vmatpush3.msra.mxu1 %v3557_v32 }
 0xe66   :  { %5186 = vmatprep.subr.mxu1 %v5299_v2 }
 0xefe   :  { %v3396_v33 = vpop.f32.mrf.mxu1 }
 0xf00   :  { %v5101_v34 = vpop.f32.mrf.mxu1 }
 0xf02   :  { %v3469_v35 = vpop.f32.mrf.mxu1 }
 0xf03   :  { %v3470_v37 = vadd.f32 %v3469_v35, %v3396_v33 }
 0xf04   :  { %v5108_v36 = vpop.f32.mrf.mxu1 }
 0xf06   :  { %v3544_v38 = vpop.f32.mrf.mxu1 }
 0xf07   :  { %v3548_v39 = vadd.f32 %v3544_v38, %v3470_v37 }
 0xf08   :  { %v5115_v41 = vpop.f32.mrf.mxu1 }
 0xf09   :  { %v3555_v42 = vadd.f32 %v3553_v40, %v3548_v39 }
 0xf0b   :  { %v3556_v43 = vmax.f32 %v3555_v42, 0.0 }
 0xf0d   :  { %5149 = vmatmul.mubr.f32.vlgmr.msra.gmra.mxu1 %v3556_v43  ;;  %5184 = vmatmul.mubr.f32.vlgmr.msra.gmra.mxu0 %v3556_v43 }
 0xf0e   :  { %5192 = vmatpush3.msra.mxu0 %v3556_v43  ;;  %5188 = vmatprep.mubr.msk.f32.mxu1 %vm5300_vm0, %v5299_v2 }
 0xf0f   :  { %5193 = vmatprep.mubr.msk.f32.mxu0 %vm5300_vm0, %v5299_v2 }
 0xf11   :  { %5194 = vmatmul.mubr.msk.f32.vlgmr.msra.gmra.mxu0 %vm806_vm4, %v3729_v44 }
 0xfcd   :  { %v3639_v46 = vpop.f32.mrf.mxu1  ;;  %v3725_v47 = vpop.f32.mrf.mxu0 }
 0xfce   :  { %5187 = vmatpush3.msra.mxu1 %v3639_v46 }
 0xfcf   :  { %v5150_v48 = vpop.f32.mrf.mxu1  ;;  %v5185_v49 = vpop.f32.mrf.mxu0  ;;  %5196 = vmatprep.subr.mxu1 %v5299_v2  ;;  %5189 = vmatmul.mubr.msk.f32.vlgmr.msra.gmra.mxu1 %vm806_vm4, %v4157_v45 }
 0xfd0   :  { %5197 = vmatpush3.msra.mxu1 %v3725_v47  ;;  %5198 = vmatprep.mubr.msk.f32.mxu1 %vm5300_vm0, %v5299_v2 }
 0xfd1   :  { %v3874_v51 = vpop.f32.mrf.mxu0 }
 0xfd3   :  { %5199 = vmatmul.mubr.msk.f32.vlgmr.msra.gmra.mxu1 %vm806_vm4, %v4160_v50  ;;  %v5195_v52 = vpop.f32.mrf.mxu0 }
0x108f   :  { %v3801_v53 = vpop.f32.mrf.mxu1 }
0x1090   :  { %v3875_v55 = vadd.f32 %v3874_v51, %v3801_v53 }
0x1091   :  { %v5190_v54 = vpop.f32.mrf.mxu1 }
0x1093   :  { %v3949_v56 = vpop.f32.mrf.mxu1 }
0x1094   :  { %v3953_v57 = vadd.f32 %v3949_v56, %v3875_v55 }
0x1095   :  { %v5200_v58 = vpop.f32.mrf.mxu1 }
0x1096   :  { %3954 = vst [vmem:[#allocation2] sm:$0x7] %v3953_v57 }
0x1097   :  { %5254 = shalt.err (!%p5251_p4)
}
0x1098   :  { %3964 = dma.vmem_to_hbm [thread:$0]  %s3962_s15, 64, %s5466_s3, [#allocation3]  }
0x1099   :  { %5263 = dma.done.wait [#allocation3], 64  }
0x109a   :  { %5264 = vsyncadd [#allocation3], 4294967232 }
0x109b   :  { %3980 = vsyncpa [#allocation3], 1 }

</bundles_post_ra>
